<compile_context>
chip_gen: v6e
topology: v6e:2x2x1
jax: 0.10.0
libtpu: 0.0.40
codegen_flags: <defaults>
</compile_context>

<pallas_src>
import jax
import jax.numpy as jnp
from jax.experimental import pallas as pl
from jax.experimental.pallas import tpu as pltpu


def _cdiv(a, b):
    return (a + b - 1) // b


def _round_up(x, m):
    return ((x + m - 1) // m) * m


def value_function_kernel(s_ref, w1_ref, b1_ref, w2_ref, b2_ref, w3_ref, b3_ref,
                          o_ref):
    """Fused 3-layer MLP (Linear-ReLU-Linear-ReLU-Linear) on one batch tile."""
    # Layer 1: [TB, S] @ [S, H] on the MXU (bf16 inputs, f32 accumulation).
    h = jnp.dot(s_ref[...], w1_ref[...], preferred_element_type=jnp.float32)
    h = jnp.maximum(h + b1_ref[...], 0.0)

    # Layer 2: [TB, H] @ [H, H] on the MXU (bf16 inputs, f32 accumulation).
    h = jnp.dot(h.astype(jnp.bfloat16), w2_ref[...],
                preferred_element_type=jnp.float32)
    h = jnp.maximum(h + b2_ref[...], 0.0)

    # Output layer H -> 1, kept off the MXU: VPU multiply against the broadcast
    # [1, H] weight row + XLU lane reduce.  Written lane-dense as a (1, TB) row
    # (one small relayout per tile).
    v = jnp.sum(h * w3_ref[...], axis=-1, keepdims=True) + b3_ref[...]   # (TB, 1)
    o_ref[...] = jnp.reshape(v, (1, -1)).astype(o_ref.dtype)


def value_function_forward(state, params, *, max_tile=4096):
    """Fused, batch-tiled Pallas forward pass.  Returns shape [B] float32."""
    w1, b1, w2, b2, w3, b3 = params
    B, S = state.shape
    H = w1.shape[1]

    # MXU operands in bf16 (f32 accumulation happens in-kernel).  Casting the
    # state here (not in-kernel) halves its HBM stream and VMEM tile.
    state_bf = state.astype(jnp.bfloat16)
    w1_bf = w1.astype(jnp.bfloat16)
    w2_bf = w2.astype(jnp.bfloat16)
    w3_row = w3.reshape(1, H).astype(jnp.float32)   # final proj as a lane row
    b3_2d = b3.reshape(1, 1).astype(jnp.float32)

    # Even-split batch tiling: fewest >=256-aligned equal tiles (keeps padding
    # under 256 rows), forced to >= 2 grid steps at B >= 2048 so the "parallel"
    # axis can shard across both v7x TensorCores.
    n_tiles = max(1, _cdiv(B, max_tile))
    if B >= 2048:
        n_tiles = max(n_tiles, 2)
    TB = _round_up(_cdiv(B, n_tiles), 256)
    B_pad = n_tiles * TB
    if B_pad != B:
        state_bf = jnp.pad(state_bf, ((0, B_pad - B), (0, 0)))

    flops = 2 * B_pad * (S * H + H * H + H)
    bytes_accessed = (
        B_pad * S * 2 + B_pad * 4                 # bf16 state in, f32 out
        + (S * H + H * H) * 2                     # bf16 w1, w2
        + (H + H + H + 1) * 4)                    # f32 b1, b2, w3 row, b3

    out = pl.pallas_call(
        value_function_kernel,
        out_shape=jax.ShapeDtypeStruct((n_tiles, TB), jnp.float32),
        grid=(n_tiles,),
        in_specs=[
            pl.BlockSpec((TB, S), lambda i: (i, 0)),   # state: streamed tile
            pl.BlockSpec((S, H), lambda i: (0, 0)),    # w1: VMEM-resident
            pl.BlockSpec((1, H), lambda i: (0, 0)),    # b1: VMEM-resident
            pl.BlockSpec((H, H), lambda i: (0, 0)),    # w2: VMEM-resident
            pl.BlockSpec((1, H), lambda i: (0, 0)),    # b2: VMEM-resident
            pl.BlockSpec((1, H), lambda i: (0, 0)),    # w3 row: VMEM-resident
            pl.BlockSpec((1, 1), lambda i: (0, 0)),    # b3: VMEM-resident
        ],
        # Lane-dense output: one (1, TB) row per grid step.
        out_specs=pl.BlockSpec((1, TB), lambda i: (i, 0)),
        compiler_params=pltpu.CompilerParams(
            dimension_semantics=("parallel",),
            vmem_limit_bytes=48 * 1024 * 1024,
        ),
        cost_estimate=pl.CostEstimate(
            flops=int(flops), transcendentals=0,
            bytes_accessed=int(bytes_accessed)),
    )(state_bf, w1_bf, b1, w2_bf, b2, w3_row, b3_2d)

    # squeeze_output=True in the PyTorch mlp: [B, 1] -> [B].
    return out.reshape(-1)[:B]


def init_value_function_params(key, state_dim, hidden_dim=256, n_hidden=2):
    """Deterministic init matching nn.Linear's U(-1/sqrt(fan_in), 1/sqrt(fan_in)).

    Weights are returned as [in, out] (transposed vs PyTorch), biases as [1, out].
    Only n_hidden=2 is materialized here (the default ValueFunction).
    """
    assert n_hidden == 2, "this script materializes the default n_hidden=2 MLP"
    dims = [state_dim, hidden_dim, hidden_dim, 1]
    keys = jax.random.split(key, 2 * (len(dims) - 1))
    params = []
    for i in range(len(dims) - 1):
        fan_in, fan_out = dims[i], dims[i + 1]
        bound = 1.0 / jnp.sqrt(jnp.float32(fan_in))
        w = jax.random.uniform(keys[2 * i], (fan_in, fan_out),
                               minval=-bound, maxval=bound, dtype=jnp.float32)
        b = jax.random.uniform(keys[2 * i + 1], (1, fan_out),
                               minval=-bound, maxval=bound, dtype=jnp.float32)
        params.extend([w, b])
    return tuple(params)


def value_function_ref(state, params):
    """Pure-JAX all-f32 reference (the exact PyTorch ValueFunction semantics)."""
    w1, b1, w2, b2, w3, b3 = params
    h = jnp.maximum(state @ w1 + b1, 0.0)
    h = jnp.maximum(h @ w2 + b2, 0.0)
    return (h @ w3 + b3)[:, 0]


def value_function_ref_bf16(state, params):
    """Reference using the kernel's bf16-input / f32-accumulate matmuls."""
    w1, b1, w2, b2, w3, b3 = params
    x = state.astype(jnp.bfloat16)
    h = jnp.dot(x, w1.astype(jnp.bfloat16), preferred_element_type=jnp.float32)
    h = jnp.maximum(h + b1, 0.0)
    h = jnp.dot(h.astype(jnp.bfloat16), w2.astype(jnp.bfloat16),
                preferred_element_type=jnp.float32)
    h = jnp.maximum(h + b2, 0.0)
    return jnp.sum(h * w3.reshape(1, -1), axis=-1) + b3[0, 0]


if __name__ == "__main__":
    key = jax.random.PRNGKey(0)
    k_param, k_state = jax.random.split(key)

    batch = 8
    state_dim = 32
    hidden_dim = 32   # small hidden size for the synthetic example

    params = init_value_function_params(k_param, state_dim, hidden_dim, n_hidden=2)
    state = jax.random.normal(k_state, (batch, state_dim), dtype=jnp.float32)

    out = value_function_forward(state, params)
    out = jax.block_until_ready(out)
    assert out.shape == (batch,), out.shape

    ref_bf16 = value_function_ref_bf16(state, params)
    ref_f32 = value_function_ref(state, params)
    # Tight match against a bf16-input / f32-accumulate reference ...
    assert jnp.allclose(out, ref_bf16, atol=1e-4, rtol=1e-4), (out, ref_bf16)
    # ... and within bf16 rounding error of the all-f32 PyTorch semantics.
    assert jnp.allclose(out, ref_f32, atol=5e-2, rtol=5e-2), (out, ref_f32)

    print("KERNEL_OK")
</pallas_src>

<mosaic_0001>
module attributes {stable_mosaic.version = 11 : i64} {
  func.func @value_function_kernel(%arg0: i32, %arg1: memref<256x32xbf16, #tpu.memory_space<vmem>>, %arg2: memref<32x32xbf16, #tpu.memory_space<vmem>>, %arg3: memref<1x32xf32, #tpu.memory_space<vmem>>, %arg4: memref<32x32xbf16, #tpu.memory_space<vmem>>, %arg5: memref<1x32xf32, #tpu.memory_space<vmem>>, %arg6: memref<1x32xf32, #tpu.memory_space<vmem>>, %arg7: memref<1x1xf32, #tpu.memory_space<vmem>>, %arg8: memref<1x256xf32, #tpu.memory_space<vmem>>) attributes {dimension_semantics = [#tpu.dimension_semantics<parallel>], iteration_bounds = array<i64: 1>, scalar_prefetch = 0 : i64, scratch_operands = 0 : i64, tpu.core_type = #tpu.core_type<tc>, window_params = [{transform_indices = @transform_0, window_bounds = array<i64: 256, 32>}, {pipeline_mode = #tpu.pipeline_mode<synchronous>, transform_indices = @transform_1, window_bounds = array<i64: 32, 32>}, {pipeline_mode = #tpu.pipeline_mode<synchronous>, transform_indices = @transform_2, window_bounds = array<i64: 1, 32>}, {pipeline_mode = #tpu.pipeline_mode<synchronous>, transform_indices = @transform_3, window_bounds = array<i64: 32, 32>}, {pipeline_mode = #tpu.pipeline_mode<synchronous>, transform_indices = @transform_4, window_bounds = array<i64: 1, 32>}, {pipeline_mode = #tpu.pipeline_mode<synchronous>, transform_indices = @transform_5, window_bounds = array<i64: 1, 32>}, {pipeline_mode = #tpu.pipeline_mode<synchronous>, transform_indices = @transform_6, window_bounds = array<i64: 1, 1>}, {transform_indices = @transform_7, window_bounds = array<i64: 1, 256>}]} {
    %c0 = arith.constant 0 : index
    %c0_0 = arith.constant 0 : index
    %0 = vector.load %arg1[%c0, %c0_0] : memref<256x32xbf16, #tpu.memory_space<vmem>>, vector<256x32xbf16>
    %c0_1 = arith.constant 0 : index
    %c0_2 = arith.constant 0 : index
    %1 = vector.load %arg2[%c0_1, %c0_2] : memref<32x32xbf16, #tpu.memory_space<vmem>>, vector<32x32xbf16>
    %cst = arith.constant dense<0.000000e+00> : vector<256x32xf32>
    %2 = tpu.matmul %0, %1, %cst {dimension_numbers = #tpu.dot_dimension_numbers<[1], [0], [0], [1], [0, 0, 1, 1], [], []>} : vector<256x32xbf16>, vector<32x32xbf16>, vector<256x32xf32> -> vector<256x32xf32>
    %c0_3 = arith.constant 0 : index
    %c0_4 = arith.constant 0 : index
    %3 = vector.load %arg3[%c0_3, %c0_4] : memref<1x32xf32, #tpu.memory_space<vmem>>, vector<1x32xf32>
    %4 = vector.broadcast %3 : vector<1x32xf32> to vector<256x32xf32>
    %5 = arith.addf %2, %4 : vector<256x32xf32>
    %cst_5 = arith.constant 0.000000e+00 : f32
    %6 = vector.broadcast %cst_5 : f32 to vector<256x32xf32>
    %7 = arith.maximumf %5, %6 : vector<256x32xf32>
    %8 = arith.truncf %7 : vector<256x32xf32> to vector<256x32xbf16>
    %c0_6 = arith.constant 0 : index
    %c0_7 = arith.constant 0 : index
    %9 = vector.load %arg4[%c0_6, %c0_7] : memref<32x32xbf16, #tpu.memory_space<vmem>>, vector<32x32xbf16>
    %cst_8 = arith.constant dense<0.000000e+00> : vector<256x32xf32>
    %10 = tpu.matmul %8, %9, %cst_8 {dimension_numbers = #tpu.dot_dimension_numbers<[1], [0], [0], [1], [0, 0, 1, 1], [], []>} : vector<256x32xbf16>, vector<32x32xbf16>, vector<256x32xf32> -> vector<256x32xf32>
    %c0_9 = arith.constant 0 : index
    %c0_10 = arith.constant 0 : index
    %11 = vector.load %arg5[%c0_9, %c0_10] : memref<1x32xf32, #tpu.memory_space<vmem>>, vector<1x32xf32>
    %12 = vector.broadcast %11 : vector<1x32xf32> to vector<256x32xf32>
    %13 = arith.addf %10, %12 : vector<256x32xf32>
    %cst_11 = arith.constant 0.000000e+00 : f32
    %14 = vector.broadcast %cst_11 : f32 to vector<256x32xf32>
    %15 = arith.maximumf %13, %14 : vector<256x32xf32>
    %c0_12 = arith.constant 0 : index
    %c0_13 = arith.constant 0 : index
    %16 = vector.load %arg6[%c0_12, %c0_13] : memref<1x32xf32, #tpu.memory_space<vmem>>, vector<1x32xf32>
    %17 = vector.broadcast %16 : vector<1x32xf32> to vector<256x32xf32>
    %18 = arith.mulf %15, %17 : vector<256x32xf32>
    %cst_14 = arith.constant dense<0.000000e+00> : vector<256xf32>
    %19 = vector.multi_reduction <add>, %18, %cst_14 [1] : vector<256x32xf32> to vector<256xf32>
    %20 = vector.shape_cast %19 : vector<256xf32> to vector<256x1xf32>
    %c0_15 = arith.constant 0 : index
    %c0_16 = arith.constant 0 : index
    %21 = vector.load %arg7[%c0_15, %c0_16] : memref<1x1xf32, #tpu.memory_space<vmem>>, vector<1x1xf32>
    %22 = vector.broadcast %21 : vector<1x1xf32> to vector<256x1xf32>
    %23 = arith.addf %20, %22 : vector<256x1xf32>
    %24 = vector.shape_cast %23 : vector<256x1xf32> to vector<1x256xf32>
    %c0_17 = arith.constant 0 : index
    %c0_18 = arith.constant 0 : index
    %25 = vector.load %arg8[%c0_17, %c0_18] : memref<1x256xf32, #tpu.memory_space<vmem>>, vector<1x256xf32>
    tpu.vector_store %arg8[%c0_17, %c0_18], %24 {strides = array<i32>} : memref<1x256xf32, #tpu.memory_space<vmem>>, vector<1x256xf32>,
    return
  }
  func.func @transform_0(%arg0: i32) -> (i32, i32) {
    %c0_i32 = arith.constant 0 : i32
    %c0_i32_0 = arith.constant 0 : i32
    return %arg0, %c0_i32 : i32, i32
  }
  func.func @transform_1(%arg0: i32) -> (i32, i32) {
    %c0_i32 = arith.constant 0 : i32
    %c0_i32_0 = arith.constant 0 : i32
    %c0_i32_1 = arith.constant 0 : i32
    return %c0_i32, %c0_i32_0 : i32, i32
  }
  func.func @transform_2(%arg0: i32) -> (i32, i32) {
    %c0_i32 = arith.constant 0 : i32
    %c0_i32_0 = arith.constant 0 : i32
    %c0_i32_1 = arith.constant 0 : i32
    return %c0_i32, %c0_i32_0 : i32, i32
  }
  func.func @transform_3(%arg0: i32) -> (i32, i32) {
    %c0_i32 = arith.constant 0 : i32
    %c0_i32_0 = arith.constant 0 : i32
    %c0_i32_1 = arith.constant 0 : i32
    return %c0_i32, %c0_i32_0 : i32, i32
  }
  func.func @transform_4(%arg0: i32) -> (i32, i32) {
    %c0_i32 = arith.constant 0 : i32
    %c0_i32_0 = arith.constant 0 : i32
    %c0_i32_1 = arith.constant 0 : i32
    return %c0_i32, %c0_i32_0 : i32, i32
  }
  func.func @transform_5(%arg0: i32) -> (i32, i32) {
    %c0_i32 = arith.constant 0 : i32
    %c0_i32_0 = arith.constant 0 : i32
    %c0_i32_1 = arith.constant 0 : i32
    return %c0_i32, %c0_i32_0 : i32, i32
  }
  func.func @transform_6(%arg0: i32) -> (i32, i32) {
    %c0_i32 = arith.constant 0 : i32
    %c0_i32_0 = arith.constant 0 : i32
    %c0_i32_1 = arith.constant 0 : i32
    return %c0_i32, %c0_i32_0 : i32, i32
  }
  func.func @transform_7(%arg0: i32) -> (i32, i32) {
    %c0_i32 = arith.constant 0 : i32
    %c0_i32_0 = arith.constant 0 : i32
    return %arg0, %c0_i32 : i32, i32
  }
}

</mosaic_0001>

<bundles_post_ra>
// kernel: tpu_custom_call.1
= control target key start
LH: loop header
LB: loop body
LE: loop exit
PB: predicated region body
PF: predicated region fallthrough
CT: control target
= control target key end

     0   :  { %s6076_s0 = inlined_call_operand.vmem [shape: bf16[256,32], index: 0, kind: input, shape index: {}]   ;;  %s6077_s1 = inlined_call_operand.vmem [shape: bf16[32,32], index: 1, kind: input, shape index: {}]   ;;  %s6078_s2 = inlined_call_operand.vmem [shape: f32[1,32], index: 2, kind: input, shape index: {}]   ;;  %s6079_s3 = inlined_call_operand.vmem [shape: bf16[32,32], index: 3, kind: input, shape index: {}]   ;;  %s6080_s4 = inlined_call_operand.vmem [shape: f32[1,32], index: 4, kind: input, shape index: {}]   ;;  %s6081_s5 = inlined_call_operand.vmem [shape: f32[1,32], index: 5, kind: input, shape index: {}]   ;;  %s6082_s6 = inlined_call_operand.<no memory space> [shape: f32[1,1], index: 6, kind: input, shape index: {}]   ;;  %s6083_s7 = inlined_call_operand.hbm [shape: f32[1,256], index: 7, kind: output, shape index: {}]  }
   0x1   :  { %v12_v0 = vstv %s6082_s6 }
   0x2   :  { %13 = vst [vmem:[#allocation2] sm:$0x1] %v12_v0 }
   0x3   :  { %v4583_v1 = vld [vmem:[%s6077_s1 + $0x8] sm:$0xff]   ;;  %v4584_v2 = vld [vmem:[%s6077_s1] sm:$0xff]   ;;  %vm165_vm0 = vcmask 261120   ;;  %v4587_v5 = vld [vmem:[%s6076_s0 + $0x10] sm:$0xff]  }
   0x4   :  { %4506 = vmatprep.subr.bf16.mxu0 %v4583_v1  ;;  %v4585_v3 = vld [vmem:[%s6076_s0] sm:$0xff]   ;;  %v4586_v4 = vld [vmem:[%s6076_s0 + $0x8] sm:$0xff]   ;;  %v4588_v6 = vld [vmem:[%s6076_s0 + $0x18] sm:$0xff]  }
   0x5   :  { %4507 = vmatpush3.bf16.msra.mxu0 %v4583_v1  ;;  %4510 = vmatprep.mubr.msk.bf16.mxu0 %vm165_vm0, %v4585_v3  ;;  %v4589_v7 = vld [vmem:[%s6076_s0 + $0x20] sm:$0xff]  }
   0x6   :  { %4508 = vmatprep.subr.bf16.mxu0 %v4584_v2 }
   0x9   :  { %4509 = vmatpush3.bf16.msra.mxu0 %v4584_v2 }
   0xc   :  { %4511 = vmatmul.mubr.msk.bf16.vlgmr.msra.gmra.mxu0 %vm165_vm0, %v4586_v4 }
   0xd   :  { %4514 = vmatprep.mubr.msk.bf16.mxu0 %vm165_vm0, %v4587_v5 }
  0x14   :  { %4515 = vmatmul.mubr.msk.bf16.gmra.mxu0 %vm165_vm0, %v4588_v6 }
  0x15   :  { %4518 = vmatprep.mubr.msk.bf16.mxu0 %vm165_vm0, %v4589_v7 }
  0x16   :  { %14 = vsyncpa [#allocation4], 0  ;;  %v4590_v8 = vld [vmem:[%s6076_s0 + $0x28] sm:$0xff]   ;;  %v4591_v9 = vld [vmem:[%s6076_s0 + $0x30] sm:$0xff]   ;;  %vm4136_vm1 = vcmask 130112   ;;  %vm4143_vm2 = vcmask 195712  }
  0x17   :  { %v4592_v10 = vld [vmem:[%s6076_s0 + $0x38] sm:$0xff]   ;;  %v4593_v11 = vld [vmem:[%s6076_s0 + $0x40] sm:$0xff]   ;;  %v4594_v12 = vld [vmem:[%s6076_s0 + $0x48] sm:$0xff]   ;;  %vm4150_vm3 = vcmask 261312   ;;  %vm4157_vm4 = vcmask 326912   ;;  %vm4164_vm5 = vcmask 392512  }
  0x18   :  { %v4595_v13 = vld [vmem:[%s6076_s0 + $0x50] sm:$0xff]   ;;  %v4596_v14 = vld [vmem:[%s6076_s0 + $0x58] sm:$0xff]   ;;  %v4597_v15 = vld [vmem:[%s6076_s0 + $0x60] sm:$0xff]   ;;  %vm4171_vm6 = vcmask 458112   ;;  %vm4178_vm7 = vcmask 523712   ;;  %vm4185_vm8 = vcmask 589312  }
  0x19   :  { %v4598_v16 = vld [vmem:[%s6076_s0 + $0x68] sm:$0xff]   ;;  %v4599_v17 = vld [vmem:[%s6076_s0 + $0x70] sm:$0xff]   ;;  %v4600_v18 = vld [vmem:[%s6076_s0 + $0x78] sm:$0xff]   ;;  %vm4192_vm9 = vcmask 654912   ;;  %vm4199_vm10 = vcmask 720512   ;;  %vm4206_vm11 = vcmask 786112  }
  0x1a   :  { %v4601_v19 = vld [vmem:[%s6079_s3 + $0x8] sm:$0xff]   ;;  %v4602_v20 = vld [vmem:[%s6079_s3] sm:$0xff]   ;;  %vm4213_vm12 = vcmask 851712   ;;  %vm4220_vm13 = vcmask 917312   ;;  %vm4227_vm14 = vcmask 982912   ;;  %vm4234_vm15 = vcmask 1048512  }
  0x1b   :  { %4542 = vmatprep.subr.bf16.mxu1 %v4601_v19  ;;  %v4751_v23 = vld [vmem:[%s6078_s2] ss:$0 sm:$0xff] }
  0x1c   :  { %4519 = vmatmul.mubr.msk.bf16.gmra.mxu0 %vm165_vm0, %v4590_v8  ;;  %4543 = vmatpush3.bf16.msra.mxu1 %v4601_v19 }
  0x1d   :  { %4522 = vmatprep.mubr.msk.bf16.mxu0 %vm165_vm0, %v4591_v9  ;;  %4544 = vmatprep.subr.bf16.mxu1 %v4602_v20 }
  0x20   :  { %4545 = vmatpush3.bf16.msra.mxu1 %v4602_v20 }
  0x24   :  { %4523 = vmatmul.mubr.msk.bf16.gmra.mxu0 %vm165_vm0, %v4592_v10 }
  0x25   :  { %4526 = vmatprep.mubr.msk.bf16.mxu0 %vm165_vm0, %v4593_v11 }
  0x2c   :  { %4527 = vmatmul.mubr.msk.bf16.gmra.mxu0 %vm165_vm0, %v4594_v12 }
  0x2d   :  { %4530 = vmatprep.mubr.msk.bf16.mxu0 %vm165_vm0, %v4595_v13 }
  0x34   :  { %4531 = vmatmul.mubr.msk.bf16.gmra.mxu0 %vm165_vm0, %v4596_v14 }
  0x35   :  { %4534 = vmatprep.mubr.msk.bf16.mxu0 %vm165_vm0, %v4597_v15 }
  0x3c   :  { %4535 = vmatmul.mubr.msk.bf16.gmra.mxu0 %vm165_vm0, %v4598_v16 }
  0x3d   :  { %4538 = vmatprep.mubr.msk.bf16.mxu0 %vm165_vm0, %v4599_v17 }
  0x44   :  { %4539 = vmatmul.mubr.msk.bf16.gmra.mxu0 %vm165_vm0, %v4600_v18 }
  0xcc   :  { %v4512_v21 = vpop.f32.mrf.mxu0 }
  0xcd   :  { %v257_v27 = vadd.f32 %v4512_v21, %v4751_v23 }
  0xce   :  { %v248_v22 = vpop.f32.mrf.mxu0 }
  0xcf   :  { %v249_v25 = vadd.f32 %v4751_v23, %v248_v22  ;;  %v377_v34 = vmax.f32 %v257_v27, 0.0 }
  0xd0   :  { %v4513_v24 = vpop.f32.mrf.mxu0 }
  0xd1   :  { %v260_v26 = vadd.f32 %v4513_v24, %v4751_v23  ;;  %v375_v32 = vmax.f32 %v249_v25, 0.0 }
  0xd2   :  { %v251_v28 = vpop.f32.mrf.mxu0 }
  0xd3   :  { %v252_v29 = vadd.f32 %v4751_v23, %v251_v28  ;;  %v378_v30 = vmax.f32 %v260_v26, 0.0 }
  0xd4   :  { %v4516_v31 = vpop.f32.mrf.mxu0 }
  0xd5   :  { %v376_v33 = vmax.f32 %v252_v29, 0.0  ;;  %v408_v37 = vpack.c.bf16 %v378_v30, %v377_v34  ;;  %v273_v41 = vadd.f32 %v4516_v31, %v4751_v23 }
  0xd6   :  { %v264_v35 = vpop.f32.mrf.mxu0 }
  0xd7   :  { %v407_v36 = vpack.c.bf16 %v376_v33, %v375_v32  ;;  %v265_v39 = vadd.f32 %v4751_v23, %v264_v35  ;;  %v381_v48 = vmax.f32 %v273_v41, 0.0 }
  0xd8   :  { %v4517_v38 = vpop.f32.mrf.mxu0 }
  0xd9   :  { %v276_v40 = vadd.f32 %v4517_v38, %v4751_v23  ;;  %4546 = vmatprep.mubr.msk.bf16.mxu1 %vm165_vm0, %v407_v36  ;;  %v379_v46 = vmax.f32 %v265_v39, 0.0 }
  0xda   :  { %v267_v42 = vpop.f32.mrf.mxu0  ;;  %4547 = vmatmul.mubr.msk.bf16.vlgmr.msra.gmra.mxu1 %vm165_vm0, %v408_v37 }
  0xdb   :  { %v268_v43 = vadd.f32 %v4751_v23, %v267_v42  ;;  %v382_v44 = vmax.f32 %v276_v40, 0.0 }
  0xdc   :  { %v4520_v45 = vpop.f32.mrf.mxu0 }
  0xdd   :  { %v380_v47 = vmax.f32 %v268_v43, 0.0  ;;  %v410_v51 = vpack.c.bf16 %v382_v44, %v381_v48  ;;  %v289_v55 = vadd.f32 %v4520_v45, %v4751_v23 }
  0xde   :  { %v280_v49 = vpop.f32.mrf.mxu0 }
  0xdf   :  { %v409_v50 = vpack.c.bf16 %v380_v47, %v379_v46  ;;  %v281_v53 = vadd.f32 %v4751_v23, %v280_v49  ;;  %v385_v62 = vmax.f32 %v289_v55, 0.0 }
  0xe0   :  { %v4521_v52 = vpop.f32.mrf.mxu0 }
  0xe1   :  { %v292_v54 = vadd.f32 %v4521_v52, %v4751_v23  ;;  %4550 = vmatprep.mubr.msk.bf16.mxu1 %vm165_vm0, %v409_v50  ;;  %v383_v60 = vmax.f32 %v281_v53, 0.0 }
  0xe2   :  { %v283_v56 = vpop.f32.mrf.mxu0  ;;  %4551 = vmatmul.mubr.msk.bf16.gmra.mxu1 %vm165_vm0, %v410_v51 }
  0xe3   :  { %v284_v57 = vadd.f32 %v4751_v23, %v283_v56  ;;  %v386_v58 = vmax.f32 %v292_v54, 0.0 }
  0xe4   :  { %v4524_v59 = vpop.f32.mrf.mxu0 }
  0xe5   :  { %v384_v61 = vmax.f32 %v284_v57, 0.0  ;;  %v412_v1 = vpack.c.bf16 %v386_v58, %v385_v62  ;;  %v305_v5 = vadd.f32 %v4524_v59, %v4751_v23 }
  0xe6   :  { %v296_v63 = vpop.f32.mrf.mxu0 }
  0xe7   :  { %v411_v0 = vpack.c.bf16 %v384_v61, %v383_v60  ;;  %v297_v3 = vadd.f32 %v4751_v23, %v296_v63  ;;  %v389_v12 = vmax.f32 %v305_v5, 0.0 }
  0xe8   :  { %v4525_v2 = vpop.f32.mrf.mxu0 }
  0xe9   :  { %v308_v4 = vadd.f32 %v4525_v2, %v4751_v23  ;;  %4554 = vmatprep.mubr.msk.bf16.mxu1 %vm165_vm0, %v411_v0  ;;  %v387_v10 = vmax.f32 %v297_v3, 0.0 }
  0xea   :  { %v299_v6 = vpop.f32.mrf.mxu0  ;;  %4555 = vmatmul.mubr.msk.bf16.gmra.mxu1 %vm165_vm0, %v412_v1 }
  0xeb   :  { %v300_v7 = vadd.f32 %v4751_v23, %v299_v6  ;;  %v390_v8 = vmax.f32 %v308_v4, 0.0 }
  0xec   :  { %v4528_v9 = vpop.f32.mrf.mxu0 }
  0xed   :  { %v388_v11 = vmax.f32 %v300_v7, 0.0  ;;  %v414_v15 = vpack.c.bf16 %v390_v8, %v389_v12  ;;  %v321_v19 = vadd.f32 %v4528_v9, %v4751_v23  ;;  %v4804_v7 = vld [vmem:[%s6080_s4] ss:$0 sm:$0xff]  ;;  %s4628_s4 = smov [#allocation3]  }
  0xee   :  { %v312_v13 = vpop.f32.mrf.mxu0 }
  0xef   :  { %v413_v14 = vpack.c.bf16 %v388_v11, %v387_v10  ;;  %v313_v17 = vadd.f32 %v4751_v23, %v312_v13  ;;  %v393_v27 = vmax.f32 %v321_v19, 0.0 }
  0xf0   :  { %v4529_v16 = vpop.f32.mrf.mxu0 }
  0xf1   :  { %v324_v18 = vadd.f32 %v4529_v16, %v4751_v23  ;;  %4558 = vmatprep.mubr.msk.bf16.mxu1 %vm165_vm0, %v413_v14  ;;  %v391_v25 = vmax.f32 %v313_v17, 0.0 }
  0xf2   :  { %v315_v20 = vpop.f32.mrf.mxu0  ;;  %4559 = vmatmul.mubr.msk.bf16.gmra.mxu1 %vm165_vm0, %v414_v15 }
  0xf3   :  { %v316_v21 = vadd.f32 %v4751_v23, %v315_v20  ;;  %v394_v22 = vmax.f32 %v324_v18, 0.0 }
  0xf4   :  { %v4532_v24 = vpop.f32.mrf.mxu0 }
  0xf5   :  { %v392_v26 = vmax.f32 %v316_v21, 0.0  ;;  %v416_v30 = vpack.c.bf16 %v394_v22, %v393_v27  ;;  %v337_v34 = vadd.f32 %v4532_v24, %v4751_v23 }
  0xf6   :  { %v328_v28 = vpop.f32.mrf.mxu0 }
  0xf7   :  { %v415_v29 = vpack.c.bf16 %v392_v26, %v391_v25  ;;  %v329_v32 = vadd.f32 %v4751_v23, %v328_v28  ;;  %v397_v41 = vmax.f32 %v337_v34, 0.0 }
  0xf8   :  { %v4533_v31 = vpop.f32.mrf.mxu0 }
  0xf9   :  { %v340_v33 = vadd.f32 %v4533_v31, %v4751_v23  ;;  %4562 = vmatprep.mubr.msk.bf16.mxu1 %vm165_vm0, %v415_v29  ;;  %v395_v39 = vmax.f32 %v329_v32, 0.0 }
  0xfa   :  { %v331_v35 = vpop.f32.mrf.mxu0  ;;  %4563 = vmatmul.mubr.msk.bf16.gmra.mxu1 %vm165_vm0, %v416_v30 }
  0xfb   :  { %v332_v36 = vadd.f32 %v4751_v23, %v331_v35  ;;  %v398_v37 = vmax.f32 %v340_v33, 0.0 }
  0xfc   :  { %v4536_v38 = vpop.f32.mrf.mxu0 }
  0xfd   :  { %v396_v40 = vmax.f32 %v332_v36, 0.0  ;;  %v418_v44 = vpack.c.bf16 %v398_v37, %v397_v41  ;;  %v353_v48 = vadd.f32 %v4536_v38, %v4751_v23 }
  0xfe   :  { %v344_v42 = vpop.f32.mrf.mxu0 }
  0xff   :  { %v417_v43 = vpack.c.bf16 %v396_v40, %v395_v39  ;;  %v345_v46 = vadd.f32 %v4751_v23, %v344_v42  ;;  %v401_v55 = vmax.f32 %v353_v48, 0.0 }
 0x100   :  { %v4537_v45 = vpop.f32.mrf.mxu0 }
 0x101   :  { %v356_v47 = vadd.f32 %v4537_v45, %v4751_v23  ;;  %4566 = vmatprep.mubr.msk.bf16.mxu1 %vm165_vm0, %v417_v43  ;;  %v399_v53 = vmax.f32 %v345_v46, 0.0 }
 0x102   :  { %v347_v49 = vpop.f32.mrf.mxu0  ;;  %4567 = vmatmul.mubr.msk.bf16.gmra.mxu1 %vm165_vm0, %v418_v44 }
 0x103   :  { %v348_v50 = vadd.f32 %v4751_v23, %v347_v49  ;;  %v402_v51 = vmax.f32 %v356_v47, 0.0 }
 0x104   :  { %v4540_v52 = vpop.f32.mrf.mxu0 }
 0x105   :  { %v400_v54 = vmax.f32 %v348_v50, 0.0  ;;  %v420_v58 = vpack.c.bf16 %v402_v51, %v401_v55  ;;  %v369_v62 = vadd.f32 %v4540_v52, %v4751_v23 }
 0x106   :  { %v360_v56 = vpop.f32.mrf.mxu0 }
 0x107   :  { %v419_v57 = vpack.c.bf16 %v400_v54, %v399_v53  ;;  %v361_v60 = vadd.f32 %v4751_v23, %v360_v56  ;;  %v405_v4 = vmax.f32 %v369_v62, 0.0 }
 0x108   :  { %v4541_v59 = vpop.f32.mrf.mxu0 }
 0x109   :  { %v372_v61 = vadd.f32 %v4541_v59, %v4751_v23  ;;  %4570 = vmatprep.mubr.msk.bf16.mxu1 %vm165_vm0, %v419_v57  ;;  %v403_v2 = vmax.f32 %v361_v60, 0.0 }
 0x10a   :  { %v363_v63 = vpop.f32.mrf.mxu0  ;;  %4571 = vmatmul.mubr.msk.bf16.gmra.mxu1 %vm165_vm0, %v420_v58 }
 0x10b   :  { %v364_v0 = vadd.f32 %v4751_v23, %v363_v63  ;;  %v406_v1 = vmax.f32 %v372_v61, 0.0  ;;  %v4810_v23 = vld [vmem:[%s6081_s5] ss:$0 sm:$0xff]  ;;  %s4342_s5 = sshll.u32 %s4628_s4, 4  ;;  %s4343_s5 = int_to_ptr.vmem [resolvable:$true] %s4342_s5 }
 0x10c   :  { %s4604_s19 = scalar_lea.vmem %s4343_s5, 32  ;;  %p4609_p1 = scmp.lt.s32.totalorder %s4343_s5, %s4343_s5 }
 0x10d   :  { %v404_v3 = vmax.f32 %v364_v0, 0.0  ;;  %v422_v6 = vpack.c.bf16 %v406_v1, %v405_v4  ;;  %p4605_p0 = scmp.ne.s32.totalorder %s4343_s5, %s4604_s19  ;;  %p4610_p2 = scmp.lt.s32.totalorder %s4604_s19, %s4604_s19 }
 0x10f   :  { %v421_v5 = vpack.c.bf16 %v404_v3, %v403_v2  ;;  %p4611_p3 = por %p4610_p2, %p4609_p1 }
 0x111   :  { %4574 = vmatprep.mubr.msk.bf16.mxu1 %vm165_vm0, %v421_v5  ;;  %p4612_p4 = pnand %p4611_p3, %p4605_p0 }
 0x112   :  { %4575 = vmatmul.mubr.msk.bf16.gmra.mxu1 %vm165_vm0, %v422_v6 }
 0x19a   :  { %v4548_v8 = vpop.f32.mrf.mxu1 }
 0x19b   :  { %v537_v9 = vadd.f32 %v4548_v8, %v4804_v7 }
 0x19c   :  { %v528_v10 = vpop.f32.mrf.mxu1 }
 0x19d   :  { %v657_v11 = vmax.f32 %v537_v9, 0.0  ;;  %v529_v12 = vadd.f32 %v4804_v7, %v528_v10 }
 0x19e   :  { %v4549_v13 = vpop.f32.mrf.mxu1 }
 0x19f   :  { %v655_v14 = vmax.f32 %v529_v12, 0.0  ;;  %v540_v15 = vadd.f32 %v4549_v13, %v4804_v7  ;;  %v696_v16 = vmul.f32 %v4810_v23, %v657_v11 }
 0x1a0   :  { %v531_v17 = vpop.f32.mrf.mxu1 }
 0x1a1   :  { %v658_v18 = vmax.f32 %v540_v15, 0.0  ;;  %v532_v19 = vadd.f32 %v4804_v7, %v531_v17  ;;  %v732_v20 = vsel %vm165_vm0, %v696_v16, 0.0  ;;  %v694_v21 = vmul.f32 %v4810_v23, %v655_v14 }
 0x1a2   :  { %733 = vadd.xlane.f32.xlu1 %v732_v20  ;;  %v4552_v22 = vpop.f32.mrf.mxu1 }
 0x1a3   :  { %v656_v24 = vmax.f32 %v532_v19, 0.0  ;;  %v553_v25 = vadd.f32 %v4552_v22, %v4804_v7  ;;  %v726_v26 = vsel %vm165_vm0, %v694_v21, 0.0  ;;  %v697_v27 = vmul.f32 %v4810_v23, %v658_v18 }
 0x1a4   :  { %v544_v28 = vpop.f32.mrf.mxu1  ;;  %727 = vadd.xlane.f32.xlu0 %v726_v26 }
 0x1a5   :  { %v661_v29 = vmax.f32 %v553_v25, 0.0  ;;  %v545_v30 = vadd.f32 %v4804_v7, %v544_v28  ;;  %v735_v31 = vsel %vm165_vm0, %v697_v27, 0.0  ;;  %v695_v32 = vmul.f32 %v4810_v23, %v656_v24 }
 0x1a6   :  { %736 = vadd.xlane.f32.xlu1 %v735_v31  ;;  %v4553_v33 = vpop.f32.mrf.mxu1 }
 0x1a7   :  { %v659_v34 = vmax.f32 %v545_v30, 0.0  ;;  %v556_v35 = vadd.f32 %v4553_v33, %v4804_v7  ;;  %v729_v36 = vsel %vm165_vm0, %v695_v32, 0.0  ;;  %v700_v37 = vmul.f32 %v4810_v23, %v661_v29 }
 0x1a8   :  { %v547_v38 = vpop.f32.mrf.mxu1  ;;  %730 = vadd.xlane.f32.xlu0 %v729_v36 }
 0x1a9   :  { %v662_v39 = vmax.f32 %v556_v35, 0.0  ;;  %v548_v40 = vadd.f32 %v4804_v7, %v547_v38  ;;  %v744_v42 = vsel %vm165_vm0, %v700_v37, 0.0  ;;  %v698_v46 = vmul.f32 %v4810_v23, %v659_v34 }
 0x1aa   :  { %v4556_v41 = vpop.f32.mrf.mxu1 }
 0x1ab   :  { %v660_v43 = vmax.f32 %v548_v40, 0.0  ;;  %v569_v44 = vadd.f32 %v4556_v41, %v4804_v7  ;;  %v701_v45 = vmul.f32 %v4810_v23, %v662_v39  ;;  %v738_v55 = vsel %vm165_vm0, %v698_v46, 0.0 }
 0x1ac   :  { %v560_v47 = vpop.f32.mrf.mxu1  ;;  %745 = vadd.xlane.f32.xlu0 %v744_v42 }
 0x1ad   :  { %v665_v48 = vmax.f32 %v569_v44, 0.0  ;;  %v561_v49 = vadd.f32 %v4804_v7, %v560_v47  ;;  %v747_v50 = vsel %vm165_vm0, %v701_v45, 0.0  ;;  %v699_v51 = vmul.f32 %v4810_v23, %v660_v43 }
 0x1ae   :  { %748 = vadd.xlane.f32.xlu1 %v747_v50  ;;  %v4557_v52 = vpop.f32.mrf.mxu1 }
 0x1af   :  { %v663_v53 = vmax.f32 %v561_v49, 0.0  ;;  %v572_v54 = vadd.f32 %v4557_v52, %v4804_v7  ;;  %v704_v56 = vmul.f32 %v4810_v23, %v665_v48  ;;  %v741_v60 = vsel %vm165_vm0, %v699_v51, 0.0 }
 0x1b0   :  { %v563_v57 = vpop.f32.mrf.mxu1  ;;  %739 = vadd.xlane.f32.xlu0 %v738_v55 }
 0x1b1   :  { %v666_v58 = vmax.f32 %v572_v54, 0.0  ;;  %v564_v59 = vadd.f32 %v4804_v7, %v563_v57  ;;  %v756_v62 = vsel %vm165_vm0, %v704_v56, 0.0  ;;  %v702_v2 = vmul.f32 %v4810_v23, %v663_v53 }
 0x1b2   :  { %v4560_v61 = vpop.f32.mrf.mxu1  ;;  %742 = vadd.xlane.f32.xlu1 %v741_v60 }
 0x1b3   :  { %v664_v63 = vmax.f32 %v564_v59, 0.0  ;;  %v585_v0 = vadd.f32 %v4560_v61, %v4804_v7  ;;  %v705_v1 = vmul.f32 %v4810_v23, %v666_v58  ;;  %v750_v12 = vsel %vm165_vm0, %v702_v2, 0.0 }
 0x1b4   :  { %v576_v3 = vpop.f32.mrf.mxu1  ;;  %757 = vadd.xlane.f32.xlu0 %v756_v62 }
 0x1b5   :  { %v669_v4 = vmax.f32 %v585_v0, 0.0  ;;  %v577_v5 = vadd.f32 %v4804_v7, %v576_v3  ;;  %v759_v6 = vsel %vm165_vm0, %v705_v1, 0.0  ;;  %v703_v8 = vmul.f32 %v4810_v23, %v664_v63 }
 0x1b6   :  { %v4561_v9 = vpop.f32.mrf.mxu1  ;;  %760 = vadd.xlane.f32.xlu1 %v759_v6  ;;  %v4626_v6 = vmov 0  }
 0x1b7   :  { %v667_v10 = vmax.f32 %v577_v5, 0.0  ;;  %v588_v11 = vadd.f32 %v4561_v9, %v4804_v7  ;;  %v708_v13 = vmul.f32 %v4810_v23, %v669_v4  ;;  %v753_v17 = vsel %vm165_vm0, %v703_v8, 0.0  ;;  %4581 = vset.pattern.permute.xlu1 %v4626_v6  ;;  %4582 = vset.pattern.permute.xlu0 %v4626_v6 }
 0x1b8   :  { %v579_v14 = vpop.f32.mrf.mxu1  ;;  %751 = vadd.xlane.f32.xlu0 %v750_v12 }
 0x1b9   :  { %v670_v15 = vmax.f32 %v588_v11, 0.0  ;;  %v580_v16 = vadd.f32 %v4804_v7, %v579_v14  ;;  %v768_v19 = vsel %vm165_vm0, %v708_v13, 0.0  ;;  %v706_v24 = vmul.f32 %v4810_v23, %v667_v10 }
 0x1ba   :  { %v4564_v18 = vpop.f32.mrf.mxu1  ;;  %754 = vadd.xlane.f32.xlu1 %v753_v17 }
 0x1bb   :  { %v668_v20 = vmax.f32 %v580_v16, 0.0  ;;  %v601_v21 = vadd.f32 %v4564_v18, %v4804_v7  ;;  %v709_v22 = vmul.f32 %v4810_v23, %v670_v15  ;;  %v762_v33 = vsel %vm165_vm0, %v706_v24, 0.0 }
 0x1bc   :  { %v592_v25 = vpop.f32.mrf.mxu1  ;;  %769 = vadd.xlane.f32.xlu0 %v768_v19 }
 0x1bd   :  { %v673_v26 = vmax.f32 %v601_v21, 0.0  ;;  %v593_v27 = vadd.f32 %v4804_v7, %v592_v25  ;;  %v771_v28 = vsel %vm165_vm0, %v709_v22, 0.0  ;;  %v707_v29 = vmul.f32 %v4810_v23, %v668_v20 }
 0x1be   :  { %v4565_v30 = vpop.f32.mrf.mxu1  ;;  %772 = vadd.xlane.f32.xlu1 %v771_v28 }
 0x1bf   :  { %v671_v31 = vmax.f32 %v593_v27, 0.0  ;;  %v604_v32 = vadd.f32 %v4565_v30, %v4804_v7  ;;  %v712_v34 = vmul.f32 %v4810_v23, %v673_v26  ;;  %v765_v38 = vsel %vm165_vm0, %v707_v29, 0.0 }
 0x1c0   :  { %v595_v35 = vpop.f32.mrf.mxu1  ;;  %763 = vadd.xlane.f32.xlu0 %v762_v33 }
 0x1c1   :  { %v674_v36 = vmax.f32 %v604_v32, 0.0  ;;  %v596_v37 = vadd.f32 %v4804_v7, %v595_v35  ;;  %v780_v40 = vsel %vm165_vm0, %v712_v34, 0.0  ;;  %v710_v44 = vmul.f32 %v4810_v23, %v671_v31 }
 0x1c2   :  { %v4568_v39 = vpop.f32.mrf.mxu1  ;;  %766 = vadd.xlane.f32.xlu1 %v765_v38 }
 0x1c3   :  { %v672_v41 = vmax.f32 %v596_v37, 0.0  ;;  %v617_v42 = vadd.f32 %v4568_v39, %v4804_v7  ;;  %v713_v43 = vmul.f32 %v4810_v23, %v674_v36  ;;  %v774_v53 = vsel %vm165_vm0, %v710_v44, 0.0 }
 0x1c4   :  { %v608_v45 = vpop.f32.mrf.mxu1  ;;  %781 = vadd.xlane.f32.xlu0 %v780_v40 }
 0x1c5   :  { %v677_v46 = vmax.f32 %v617_v42, 0.0  ;;  %v609_v47 = vadd.f32 %v4804_v7, %v608_v45  ;;  %v783_v48 = vsel %vm165_vm0, %v713_v43, 0.0  ;;  %v711_v49 = vmul.f32 %v4810_v23, %v672_v41 }
 0x1c6   :  { %v4569_v50 = vpop.f32.mrf.mxu1  ;;  %784 = vadd.xlane.f32.xlu1 %v783_v48  ;;  %v4627_v45 = vmov 1966171168  }
 0x1c7   :  { %v675_v51 = vmax.f32 %v609_v47, 0.0  ;;  %v620_v52 = vadd.f32 %v4569_v50, %v4804_v7  ;;  %v716_v54 = vmul.f32 %v4810_v23, %v677_v46  ;;  %v777_v58 = vsel %vm165_vm0, %v711_v49, 0.0  ;;  %v4910_v50 = vld [vmem:[#allocation2] ss:$0 sm:$0xff] }
 0x1c8   :  { %v611_v55 = vpop.f32.mrf.mxu1  ;;  %775 = vadd.xlane.f32.xlu0 %v774_v53  ;;  %v895_v46 = vunpack.c.l.s4 %v4627_v45  ;;  %v6084_v47 = vlaneseq }
 0x1c9   :  { %v678_v56 = vmax.f32 %v620_v52, 0.0  ;;  %v612_v57 = vadd.f32 %v4804_v7, %v611_v55  ;;  %v792_v60 = vsel %vm165_vm0, %v716_v54, 0.0  ;;  %v714_v0 = vmul.f32 %v4810_v23, %v675_v51 }
 0x1ca   :  { %v4572_v59 = vpop.f32.mrf.mxu1  ;;  %778 = vadd.xlane.f32.xlu1 %v777_v58  ;;  %v896_v48 = vunpack.c.0.s8 %v895_v46  ;;  %v4908_v49 = vshrl.u32 %v6084_v47, 7 }
 0x1cb   :  { %v676_v61 = vmax.f32 %v612_v57, 0.0  ;;  %v633_v62 = vadd.f32 %v4572_v59, %v4804_v7  ;;  %v717_v63 = vmul.f32 %v4810_v23, %v678_v56  ;;  %v786_v11 = vsel %vm165_vm0, %v714_v0, 0.0 }
 0x1cc   :  { %v624_v1 = vpop.f32.mrf.mxu1  ;;  %793 = vadd.xlane.f32.xlu0 %v792_v60  ;;  %6100 = vst [vmem:[#allocation6_spill] sm:$0xff] %v4908_v49  ;;  %v4913_v51 = vsub.s32 %v896_v48, %v4908_v49 }
 0x1cd   :  { %v681_v2 = vmax.f32 %v633_v62, 0.0  ;;  %v625_v3 = vadd.f32 %v4804_v7, %v624_v1  ;;  %v795_v4 = vsel %vm165_vm0, %v717_v63, 0.0  ;;  %v715_v5 = vmul.f32 %v4810_v23, %v676_v61 }
 0x1ce   :  { %v4573_v8 = vpop.f32.mrf.mxu1  ;;  %796 = vadd.xlane.f32.xlu1 %v795_v4 }
 0x1cf   :  { %v679_v9 = vmax.f32 %v625_v3, 0.0  ;;  %v636_v10 = vadd.f32 %v4573_v8, %v4804_v7  ;;  %v720_v12 = vmul.f32 %v4810_v23, %v681_v2  ;;  %v789_v16 = vsel %vm165_vm0, %v715_v5, 0.0 }
 0x1d0   :  { %v627_v13 = vpop.f32.mrf.mxu1  ;;  %787 = vadd.xlane.f32.xlu0 %v786_v11 }
 0x1d1   :  { %v682_v14 = vmax.f32 %v636_v10, 0.0  ;;  %v628_v15 = vadd.f32 %v4804_v7, %v627_v13  ;;  %v804_v18 = vsel %vm165_vm0, %v720_v12, 0.0  ;;  %v718_v22 = vmul.f32 %v4810_v23, %v679_v9 }
 0x1d2   :  { %v4576_v17 = vpop.f32.mrf.mxu1  ;;  %790 = vadd.xlane.f32.xlu1 %v789_v16 }
 0x1d3   :  { %v680_v19 = vmax.f32 %v628_v15, 0.0  ;;  %v649_v20 = vadd.f32 %v4576_v17, %v4804_v7  ;;  %v721_v21 = vmul.f32 %v4810_v23, %v682_v14  ;;  %v798_v32 = vsel %vm165_vm0, %v718_v22, 0.0 }
 0x1d4   :  { %v640_v24 = vpop.f32.mrf.mxu1  ;;  %805 = vadd.xlane.f32.xlu0 %v804_v18 }
 0x1d5   :  { %v641_v25 = vadd.f32 %v4804_v7, %v640_v24  ;;  %v807_v26 = vsel %vm165_vm0, %v721_v21, 0.0  ;;  %v719_v27 = vmul.f32 %v4810_v23, %v680_v19  ;;  %v685_v29 = vmax.f32 %v649_v20, 0.0 }
 0x1d6   :  { %v4577_v28 = vpop.f32.mrf.mxu1  ;;  %808 = vadd.xlane.f32.xlu1 %v807_v26 }
 0x1d7   :  { %v683_v30 = vmax.f32 %v641_v25, 0.0  ;;  %v652_v31 = vadd.f32 %v4577_v28, %v4804_v7  ;;  %v801_v36 = vsel %vm165_vm0, %v719_v27, 0.0  ;;  %v724_v41 = vmul.f32 %v4810_v23, %v685_v29 }
 0x1d8   :  { %v643_v33 = vpop.f32.mrf.mxu1  ;;  %799 = vadd.xlane.f32.xlu0 %v798_v32 }
 0x1d9   :  { %v686_v34 = vmax.f32 %v652_v31, 0.0  ;;  %v644_v35 = vadd.f32 %v4804_v7, %v643_v33  ;;  %v722_v37 = vmul.f32 %v4810_v23, %v683_v30  ;;  %v816_v7 = vsel %vm165_vm0, %v724_v41, 0.0 }
 0x1da   :  { %802 = vadd.xlane.f32.xlu1 %v801_v36 }
 0x1db   :  { %v684_v38 = vmax.f32 %v644_v35, 0.0  ;;  %v810_v39 = vsel %vm165_vm0, %v722_v37, 0.0  ;;  %v725_v40 = vmul.f32 %v4810_v23, %v686_v34 }
 0x1dc   :  { %811 = vadd.xlane.f32.xlu0 %v810_v39 }
 0x1dd   :  { %v819_v42 = vsel %vm165_vm0, %v725_v40, 0.0  ;;  %v723_v43 = vmul.f32 %v4810_v23, %v684_v38 }
 0x1de   :  { %820 = vadd.xlane.f32.xlu1 %v819_v42 }
 0x1df   :  { %v813_v44 = vsel %vm165_vm0, %v723_v43, 0.0 }
 0x1e0   :  { %817 = vadd.xlane.f32.xlu0 %v816_v7 }
 0x1e2   :  { %814 = vadd.xlane.f32.xlu1 %v813_v44 }
 0x22b   :  { %v734_v23 = vpop.xlane.xlu1 %733 }
 0x22c   :  { %v831_v52 = vadd.f32 %v4910_v50, %v734_v23 }
 0x22d   :  { %v728_v53 = vpop.xlane.xlu0 %727 }
 0x22e   :  { %v991_v54 = vcombine.high %v831_v52, %v831_v52  ;;  %v998_v55 = vrot.slane %v831_v52, %v4913_v51  ;;  %v829_v56 = vadd.f32 %v4910_v50, %v728_v53 }
 0x22f   :  { %v737_v57 = vpop.xlane.xlu1 %736 }
 0x230   :  { %v1005_v58 = vrot.slane %v991_v54, %v4913_v51  ;;  %v1006_v59 = vcombine.high %v998_v55, %v998_v55  ;;  %v893_v60 = vcombine.high %v829_v56, %v829_v56  ;;  %v900_v61 = vrot.slane %v829_v56, %v4913_v51 }
 0x231   :  { %v832_v62 = vadd.f32 %v4910_v50, %v737_v57  ;;  %v731_v63 = vpop.xlane.xlu0 %730  ;;  %v1014_v1 = vrot.slane %v998_v55, %v4913_v51 }
 0x232   :  { %v1007_v0 = vcombine.high %v1005_v58, %v1005_v58  ;;  %v1028_v2 = vrot.slane %v1006_v59, %v4913_v51  ;;  %v907_v3 = vrot.slane %v893_v60, %v4913_v51  ;;  %v908_v4 = vcombine.high %v900_v61, %v900_v61 }
 0x233   :  { %v1040_v5 = vcombine.high %v832_v62, %v832_v62  ;;  %v1047_v6 = vrot.slane %v832_v62, %v4913_v51  ;;  %v4926_v8 = vrot.slane %v1005_v58, %v4913_v51  ;;  %v916_v17 = vrot.slane %v900_v61, %v4913_v51 }
 0x234   :  { %v4929_v9 = vrot.slane %v1007_v0, %v4913_v51  ;;  %v2559_v10 = vcombine.low %v1014_v1, %v1028_v2  ;;  %v909_v11 = vcombine.high %v907_v3, %v907_v3  ;;  %v4410_v12 = vcombine.high %v1014_v1, %v1028_v2 }
 0x235   :  { %v930_v13 = vrot.slane %v908_v4, %v4913_v51  ;;  %v1054_v14 = vrot.slane %v1040_v5, %v4913_v51  ;;  %v1055_v15 = vcombine.high %v1047_v6, %v1047_v6  ;;  %v746_v16 = vpop.xlane.xlu0 %745  ;;  %v4937_v19 = vrot.slane %v907_v3, %v4913_v51 }
 0x236   :  { %v2561_v18 = vcombine.low %v4926_v8, %v4929_v9  ;;  %v4940_v20 = vrot.slane %v909_v11, %v4913_v51  ;;  %v830_v26 = vadd.f32 %v4910_v50, %v731_v63  ;;  %v4411_v28 = vcombine.high %v4926_v8, %v4929_v9 }
 0x237   :  { %v1056_v21 = vcombine.high %v1054_v14, %v1054_v14  ;;  %v2461_v22 = vcombine.low %v916_v17, %v930_v13  ;;  %v4406_v24 = vcombine.high %v916_v17, %v930_v13  ;;  %v1077_v25 = vrot.slane %v1055_v15, %v4913_v51  ;;  %v749_v27 = vpop.xlane.xlu1 %748 }
 0x238   :  { %v4947_v29 = vrot.slane %v2559_v10, %v4913_v51  ;;  %v4950_v30 = vrot.slane %v4410_v12, %v4913_v51  ;;  %v1063_v31 = vrot.slane %v1047_v6, %v4913_v51  ;;  %v2463_v33 = vcombine.low %v4937_v19, %v4940_v20 }
 0x239   :  { %v740_v32 = vpop.xlane.xlu0 %739  ;;  %v4956_v34 = vrot.slane %v1054_v14, %v4913_v51  ;;  %v4959_v35 = vrot.slane %v1056_v21, %v4913_v51  ;;  %v942_v36 = vcombine.high %v830_v26, %v830_v26  ;;  %v4407_v37 = vcombine.high %v4937_v19, %v4940_v20 }
 0x23a   :  { %v949_v38 = vrot.slane %v830_v26, %v4913_v51  ;;  %v835_v39 = vadd.f32 %v4910_v50, %v746_v16  ;;  %v836_v40 = vadd.f32 %v4910_v50, %v749_v27  ;;  %v4967_v41 = vrot.slane %v2461_v22, %v4913_v51 }
 0x23b   :  { %v4970_v42 = vrot.slane %v4406_v24, %v4913_v51  ;;  %v2608_v43 = vcombine.low %v1063_v31, %v1077_v25  ;;  %v833_v7 = vadd.f32 %v4910_v50, %v740_v32  ;;  %v4412_v44 = vcombine.high %v1063_v31, %v1077_v25  ;;  %v743_v14 = vpop.xlane.xlu1 %742 }
 0x23c   :  { %v956_v45 = vrot.slane %v942_v36, %v4913_v51  ;;  %v957_v46 = vcombine.high %v949_v38, %v949_v38  ;;  %v1187_v48 = vcombine.high %v835_v39, %v835_v39  ;;  %v2610_v23 = vcombine.low %v4956_v34, %v4959_v35 }
 0x23d   :  { %v1194_v52 = vrot.slane %v835_v39, %v4913_v51  ;;  %v1236_v53 = vcombine.high %v836_v40, %v836_v40  ;;  %v1243_v54 = vrot.slane %v836_v40, %v4913_v51  ;;  %v4413_v55 = vcombine.high %v4956_v34, %v4959_v35 }
 0x23e   :  { %v958_v56 = vcombine.high %v956_v45, %v956_v45  ;;  %v979_v57 = vrot.slane %v957_v46, %v4913_v51  ;;  %v1201_v58 = vrot.slane %v1187_v48, %v4913_v51  ;;  %v965_v59 = vrot.slane %v949_v38, %v4913_v51  ;;  %v758_v38 = vpop.xlane.xlu0 %757 }
 0x23f   :  { %v1202_v60 = vcombine.high %v1194_v52, %v1194_v52  ;;  %v1250_v61 = vrot.slane %v1236_v53, %v4913_v51  ;;  %v1089_v62 = vcombine.high %v833_v7, %v833_v7  ;;  %v1210_v1 = vrot.slane %v1194_v52, %v4913_v51 }
 0x240   :  { %v4985_v63 = vrot.slane %v958_v56, %v4913_v51  ;;  %v1203_v0 = vcombine.high %v1201_v58, %v1201_v58  ;;  %v1251_v2 = vcombine.high %v1243_v54, %v1243_v54  ;;  %v2510_v3 = vcombine.low %v965_v59, %v979_v57 }
 0x241   :  { %v4408_v4 = vcombine.high %v965_v59, %v979_v57  ;;  %v1224_v5 = vrot.slane %v1202_v60, %v4913_v51  ;;  %v1252_v6 = vcombine.high %v1250_v61, %v1250_v61  ;;  %v4990_v10 = vrot.slane %v2608_v43, %v4913_v51  ;;  %v761_v57 = vpop.xlane.xlu1 %760 }
 0x242   :  { %v4993_v11 = vrot.slane %v4412_v44, %v4913_v51  ;;  %v4996_v12 = vrot.slane %v956_v45, %v4913_v51  ;;  %v4999_v13 = vrot.slane %v1201_v58, %v4913_v51  ;;  %v5002_v15 = vrot.slane %v1203_v0, %v4913_v51 }
 0x243   :  { %v2755_v16 = vcombine.low %v1210_v1, %v1224_v5  ;;  %v4418_v17 = vcombine.high %v1210_v1, %v1224_v5  ;;  %v1259_v21 = vrot.slane %v1243_v54, %v4913_v51  ;;  %v1273_v22 = vrot.slane %v1251_v2, %v4913_v51 }
 0x244   :  { %v5007_v24 = vrot.slane %v1252_v6, %v4913_v51  ;;  %v1096_v25 = vrot.slane %v833_v7, %v4913_v51  ;;  %v1103_v26 = vrot.slane %v1089_v62, %v4913_v51  ;;  %v2512_v27 = vcombine.low %v4996_v12, %v4985_v63 }
 0x245   :  { %v4409_v31 = vcombine.high %v4996_v12, %v4985_v63  ;;  %v5016_v32 = vrot.slane %v2510_v3, %v4913_v51  ;;  %v5019_v36 = vrot.slane %v4408_v4, %v4913_v51  ;;  %v2757_v39 = vcombine.low %v4999_v13, %v5002_v15 }
 0x246   :  { %v4419_v40 = vcombine.high %v4999_v13, %v5002_v15  ;;  %v5026_v43 = vrot.slane %v2755_v16, %v4913_v51  ;;  %v5029_v7 = vrot.slane %v1250_v61, %v4913_v51  ;;  %v2804_v44 = vcombine.low %v1259_v21, %v1273_v22 }
 0x247   :  { %v4420_v45 = vcombine.high %v1259_v21, %v1273_v22  ;;  %v1104_v46 = vcombine.high %v1096_v25, %v1096_v25  ;;  %v1105_v48 = vcombine.high %v1103_v26, %v1103_v26  ;;  %v5032_v52 = vrot.slane %v4418_v17, %v4913_v51 }
 0x248   :  { %v834_v54 = vadd.f32 %v4910_v50, %v743_v14  ;;  %v839_v56 = vadd.f32 %v4910_v50, %v758_v38  ;;  %v1112_v59 = vrot.slane %v1096_v25, %v4913_v51  ;;  %v5048_v3 = vrot.slane %v2804_v44, %v4913_v51 }
 0x249   :  { %v1126_v60 = vrot.slane %v1104_v46, %v4913_v51  ;;  %v5043_v61 = vrot.slane %v1105_v48, %v4913_v51  ;;  %v5051_v4 = vrot.slane %v4420_v45, %v4913_v51  ;;  %v5054_v5 = vrot.slane %v1103_v26, %v4913_v51 }
 0x24a   :  { %v1138_v62 = vcombine.high %v834_v54, %v834_v54  ;;  %v1145_v0 = vrot.slane %v834_v54, %v4913_v51  ;;  %v1383_v1 = vcombine.high %v839_v56, %v839_v56  ;;  %v1390_v2 = vrot.slane %v839_v56, %v4913_v51 }
 0x24b   :  { %v840_v6 = vadd.f32 %v4910_v50, %v761_v57  ;;  %v2583_v21 = vrot.slane %v2561_v18, %v4913_v51  ;;  %v2657_v22 = vcombine.low %v1112_v59, %v1126_v60  ;;  %v4414_v25 = vcombine.high %v1112_v59, %v1126_v60 }
 0x24c   :  { %v1152_v14 = vrot.slane %v1138_v62, %v4913_v51  ;;  %v1153_v16 = vcombine.high %v1145_v0, %v1145_v0  ;;  %v1397_v17 = vrot.slane %v1383_v1, %v4913_v51  ;;  %v2659_v38 = vcombine.low %v5054_v5, %v5043_v61 }
 0x24d   :  { %v1398_v44 = vcombine.high %v1390_v2, %v1390_v2  ;;  %v1161_v45 = vrot.slane %v1145_v0, %v4913_v51  ;;  %v1406_v54 = vrot.slane %v1390_v2, %v4913_v51  ;;  %v1432_v57 = vcombine.high %v840_v6, %v840_v6 }
 0x24e   :  { %v1154_v26 = vcombine.high %v1152_v14, %v1152_v14  ;;  %v1175_v46 = vrot.slane %v1153_v16, %v4913_v51  ;;  %v1399_v48 = vcombine.high %v1397_v17, %v1397_v17  ;;  %v1439_v62 = vrot.slane %v840_v6, %v4913_v51 }
 0x24f   :  { %v1420_v56 = vrot.slane %v1398_v44, %v4913_v51  ;;  %v5079_v16 = vrot.slane %v1152_v14, %v4913_v51  ;;  %v1446_v2 = vrot.slane %v1432_v57, %v4913_v51  ;;  %v5083_v47 = vrot.slane %v2657_v22, %v4913_v51 }
 0x250   :  { %v5071_v18 = vrot.slane %v1154_v26, %v4913_v51  ;;  %v2706_v59 = vcombine.low %v1161_v45, %v1175_v46  ;;  %v4416_v60 = vcombine.high %v1161_v45, %v1175_v46  ;;  %v5074_v1 = vrot.slane %v1399_v48, %v4913_v51  ;;  %v752_v46 = vpop.xlane.xlu0 %751 }
 0x251   :  { %v1447_v44 = vcombine.high %v1439_v62, %v1439_v62  ;;  %v5086_v6 = vrot.slane %v4414_v25, %v4913_v51  ;;  %v5089_v26 = vrot.slane %v1397_v17, %v4913_v51  ;;  %v2951_v45 = vcombine.low %v1406_v54, %v1420_v56 }
 0x252   :  { %v5096_v57 = vrot.slane %v2706_v59, %v4913_v51  ;;  %v4426_v58 = vcombine.high %v1406_v54, %v1420_v56  ;;  %v5099_v22 = vrot.slane %v4416_v60, %v4913_v51  ;;  %v1448_v17 = vcombine.high %v1446_v2, %v1446_v2 }
 0x253   :  { %v1469_v53 = vrot.slane %v1447_v44, %v4913_v51  ;;  %v2590_v14 = vrot.slane %v4411_v28, %v4913_v51  ;;  %v2591_v54 = vcombine.low %v4947_v29, %v4950_v30  ;;  %v837_v56 = vadd.f32 %v4910_v50, %v752_v46 }
 0x254   :  { %v1455_v59 = vrot.slane %v1439_v62, %v4913_v51  ;;  %v5115_v60 = vrot.slane %v1448_v17, %v4913_v51  ;;  %v2485_v44 = vrot.slane %v2463_v33, %v4913_v51  ;;  %v2492_v8 = vrot.slane %v4407_v37, %v4913_v51  ;;  %v755_v62 = vpop.xlane.xlu1 %754 }
 0x255   :  { %v5126_v9 = vrot.slane %v2951_v45, %v4913_v51  ;;  %v2592_v28 = vcombine.low %v2583_v21, %v2590_v14  ;;  %v1285_v29 = vcombine.high %v837_v56, %v837_v56  ;;  %v1292_v30 = vrot.slane %v837_v56, %v4913_v51 }
 0x256   :  { %v5130_v46 = vrot.slane %v4426_v58, %v4913_v51  ;;  %v5133_v17 = vrot.slane %v1446_v2, %v4913_v51  ;;  %v3000_v33 = vcombine.low %v1455_v59, %v1469_v53  ;;  %v4428_v0 = vcombine.high %v1455_v59, %v1469_v53 }
 0x257   :  { %v2599_v25 = vrot.slane %v2591_v54, %v4913_v51  ;;  %v2606_v19 = vrot.slane %v2592_v28, %v4913_v51  ;;  %v1299_v20 = vrot.slane %v1285_v29, %v4913_v51  ;;  %v1300_v37 = vcombine.high %v1292_v30, %v1292_v30 }
 0x258   :  { %v2493_v45 = vcombine.low %v4967_v41, %v4970_v42  ;;  %v2494_v58 = vcombine.low %v2485_v44, %v2492_v8  ;;  %v838_v14 = vadd.f32 %v4910_v50, %v755_v62  ;;  %v1308_v53 = vrot.slane %v1292_v30, %v4913_v51 }
 0x259   :  { %v2607_v2 = vcombine.low %v2599_v25, %v2606_v19  ;;  %v1301_v56 = vcombine.high %v1299_v20, %v1299_v20  ;;  %v1322_v54 = vrot.slane %v1300_v37, %v4913_v51  ;;  %v2632_v42 = vrot.slane %v2610_v23, %v4913_v51  ;;  %v770_v19 = vpop.xlane.xlu0 %769  ;;  %v773_v37 = vpop.xlane.xlu1 %772 }
 0x25a   :  { %v2501_v59 = vrot.slane %v2493_v45, %v4913_v51  ;;  %v2508_v28 = vrot.slane %v2494_v58, %v4913_v51  ;;  %v1334_v29 = vcombine.high %v838_v14, %v838_v14  ;;  %v1341_v48 = vrot.slane %v838_v14, %v4913_v51 }
 0x25b   :  { %4036 = vperm.xlu1 %4581, %v2607_v2   ;;  %v5151_v41 = vrot.slane %v1301_v56, %v4913_v51  ;;  %v2639_v25 = vrot.slane %v4413_v55, %v4913_v51  ;;  %v2853_v44 = vcombine.low %v1308_v53, %v1322_v54  ;;  %v5163_v45 = vrot.slane %v3000_v33, %v4913_v51 }
 0x25c   :  { %v2509_v8 = vcombine.low %v2501_v59, %v2508_v28  ;;  %v1348_v30 = vrot.slane %v1334_v29, %v4913_v51  ;;  %v1349_v62 = vcombine.high %v1341_v48, %v1341_v48  ;;  %v5166_v58 = vrot.slane %v4428_v0, %v4913_v51 }
 0x25d   :  { %v5169_v23 = vrot.slane %v1299_v20, %v4913_v51  ;;  %v4422_v14 = vcombine.high %v1308_v53, %v1322_v54  ;;  %v1357_v35 = vrot.slane %v1341_v48, %v4913_v51  ;;  %v2640_v2 = vcombine.low %v4990_v10, %v4993_v11  ;;  %v767_v20 = vpop.xlane.xlu1 %766 }
 0x25e   :  { %4030 = vperm.xlu0 %4582, %v2509_v8   ;;  %v1350_v34 = vcombine.high %v1348_v30, %v1348_v30  ;;  %v1371_v55 = vrot.slane %v1349_v62, %v4913_v51  ;;  %v2641_v56 = vcombine.low %v2632_v42, %v2639_v25  ;;  %v843_v0 = vadd.f32 %v4910_v50, %v770_v19  ;;  %v764_v62 = vpop.xlane.xlu0 %763 }
 0x25f   :  { %v844_v59 = vadd.f32 %v4910_v50, %v773_v37  ;;  %v5182_v53 = vrot.slane %v2853_v44, %v4913_v51  ;;  %v2648_v54 = vrot.slane %v2640_v2, %v4913_v51  ;;  %v5191_v42 = vrot.slane %v4422_v14, %v4913_v51 }
 0x260   :  { %v5185_v48 = vrot.slane %v1350_v34, %v4913_v51  ;;  %v2655_v10 = vrot.slane %v2641_v56, %v4913_v51  ;;  %v1579_v11 = vcombine.high %v843_v0, %v843_v0  ;;  %v1586_v28 = vrot.slane %v843_v0, %v4913_v51 }
 0x261   :  { %v1628_v29 = vcombine.high %v844_v59, %v844_v59  ;;  %v5194_v25 = vrot.slane %v1348_v30, %v4913_v51  ;;  %v2902_v8 = vcombine.low %v1357_v35, %v1371_v55  ;;  %v2534_v44 = vrot.slane %v2512_v27, %v4913_v51 }
 0x262   :  { %v4424_v19 = vcombine.high %v1357_v35, %v1371_v55  ;;  %v2656_v37 = vcombine.low %v2648_v54, %v2655_v10  ;;  %v1593_v34 = vrot.slane %v1579_v11, %v4913_v51  ;;  %v1594_v2 = vcombine.high %v1586_v28, %v1586_v28 }
 0x263   :  { %v1635_v14 = vrot.slane %v844_v59, %v4913_v51  ;;  %v1642_v30 = vrot.slane %v1628_v29, %v4913_v51  ;;  %v2541_v0 = vrot.slane %v4409_v31, %v4913_v51  ;;  %v1602_v35 = vrot.slane %v1586_v28, %v4913_v51 }
 0x264   :  { %4039 = vperm.xlu1 %4581, %v2656_v37   ;;  %v1595_v27 = vcombine.high %v1593_v34, %v1593_v34  ;;  %v1616_v55 = vrot.slane %v1594_v2, %v4913_v51  ;;  %v841_v54 = vadd.f32 %v4910_v50, %v764_v62  ;;  %v2542_v29 = vcombine.low %v5016_v32, %v5019_v36 }
 0x265   :  { %v1643_v11 = vcombine.high %v1635_v14, %v1635_v14  ;;  %v1644_v59 = vcombine.high %v1642_v30, %v1642_v30  ;;  %v5217_v21 = vrot.slane %v2902_v8, %v4913_v51  ;;  %v2543_v31 = vcombine.low %v2534_v44, %v2541_v0 }
 0x266   :  { %v5220_v63 = vrot.slane %v1595_v27, %v4913_v51  ;;  %v3147_v12 = vcombine.low %v1602_v35, %v1616_v55  ;;  %v5223_v28 = vrot.slane %v1593_v34, %v4913_v51  ;;  %v4434_v62 = vcombine.high %v1602_v35, %v1616_v55 }
 0x267   :  { %v1665_v37 = vrot.slane %v1643_v11, %v4913_v51  ;;  %v1481_v2 = vcombine.high %v841_v54, %v841_v54  ;;  %v5227_v33 = vrot.slane %v4424_v19, %v4913_v51  ;;  %v1651_v32 = vrot.slane %v1635_v14, %v4913_v51 }
 0x268   :  { %6101 = vst [vmem:[#allocation7_spill] sm:$0xff] %v5220_v63  ;;  %6102 = vst [vmem:[#allocation8_spill] sm:$0xff] %v5223_v28  ;;  %v5231_v36 = vrot.slane %v1642_v30, %v4913_v51  ;;  %v5234_v8 = vrot.slane %v1644_v59, %v4913_v51  ;;  %v5241_v0 = vrot.slane %v3147_v12, %v4913_v51  ;;  %v782_v12 = vpop.xlane.xlu0 %781 }
 0x269   :  { %v2550_v19 = vrot.slane %v2542_v29, %v4913_v51  ;;  %v2557_v27 = vrot.slane %v2543_v31, %v4913_v51  ;;  %v1488_v14 = vrot.slane %v841_v54, %v4913_v51  ;;  %v1495_v30 = vrot.slane %v1481_v2, %v4913_v51 }
 0x26a   :  { %6103 = vst [vmem:[#allocation9_spill] sm:$0xff] %v5231_v36  ;;  %6104 = vst [vmem:[#allocation10_spill] sm:$0xff] %v5234_v8  ;;  %v842_v35 = vadd.f32 %v4910_v50, %v767_v20  ;;  %v5249_v55 = vrot.slane %v4434_v62, %v4913_v51  ;;  %v3196_v11 = vcombine.low %v1651_v32, %v1665_v37 }
 0x26b   :  { %6105 = vst [vmem:[#allocation11_spill] sm:$0xff] %v5241_v0  ;;  %v2779_v59 = vrot.slane %v2757_v39, %v4913_v51  ;;  %v2786_v29 = vrot.slane %v4419_v40, %v4913_v51  ;;  %v4436_v54 = vcombine.high %v1651_v32, %v1665_v37  ;;  %v2558_v31 = vcombine.low %v2550_v19, %v2557_v27 }
 0x26c   :  { %6106 = vst [vmem:[#allocation12_spill] sm:$0xff] %v5249_v55  ;;  %v1496_v2 = vcombine.high %v1488_v14, %v1488_v14  ;;  %v1497_v34 = vcombine.high %v1495_v30, %v1495_v30  ;;  %v1530_v62 = vcombine.high %v842_v35, %v842_v35  ;;  %v1537_v44 = vrot.slane %v842_v35, %v4913_v51 }
 0x26d   :  { %v2787_v10 = vcombine.low %v5026_v43, %v5032_v52  ;;  %4033 = vperm.xlu1 %4581, %v2558_v31   ;;  %v1504_v39 = vrot.slane %v1488_v14, %v4913_v51  ;;  %v2788_v15 = vcombine.low %v2779_v59, %v2786_v29  ;;  %v847_v40 = vadd.f32 %v4910_v50, %v782_v12 }
 0x26e   :  { %v1518_v13 = vrot.slane %v1496_v2, %v4913_v51  ;;  %v5270_v32 = vrot.slane %v1497_v34, %v4913_v51  ;;  %v1544_v19 = vrot.slane %v1530_v62, %v4913_v51  ;;  %v1545_v27 = vcombine.high %v1537_v44, %v1537_v44  ;;  %v785_v34 = vpop.xlane.xlu1 %784 }
 0x26f   :  { %v5274_v35 = vrot.slane %v3196_v11, %v4913_v51  ;;  %v5277_v43 = vrot.slane %v1495_v30, %v4913_v51  ;;  %v2795_v14 = vrot.slane %v2787_v10, %v4913_v51  ;;  %v2802_v31 = vrot.slane %v2788_v15, %v4913_v51 }
 0x270   :  { %v3049_v52 = vcombine.low %v1504_v39, %v1518_v13  ;;  %v4430_v59 = vcombine.high %v1504_v39, %v1518_v13  ;;  %v1546_v29 = vcombine.high %v1544_v19, %v1544_v19  ;;  %v1567_v12 = vrot.slane %v1545_v27, %v4913_v51 }
 0x271   :  { %6107 = vst [vmem:[#allocation13_spill] sm:$0xff] %v5274_v35  ;;  %v5283_v2 = vrot.slane %v4436_v54, %v4913_v51  ;;  %v1553_v62 = vrot.slane %v1537_v44, %v4913_v51  ;;  %v1775_v11 = vcombine.high %v847_v40, %v847_v40  ;;  %v1782_v37 = vrot.slane %v847_v40, %v4913_v51 }
 0x272   :  { %v5292_v39 = vrot.slane %v1544_v19, %v4913_v51  ;;  %v2803_v13 = vcombine.low %v2795_v14, %v2802_v31  ;;  %v5295_v15 = vrot.slane %v1546_v29, %v4913_v51  ;;  %v848_v44 = vadd.f32 %v4910_v50, %v785_v34 }
 0x273   :  { %6108 = vst [vmem:[#allocation14_spill] sm:$0xff] %v5283_v2  ;;  %v1789_v54 = vrot.slane %v1775_v11, %v4913_v51  ;;  %v1790_v27 = vcombine.high %v1782_v37, %v1782_v37  ;;  %v5300_v40 = vrot.slane %v3049_v52, %v4913_v51  ;;  %v5303_v20 = vrot.slane %v4430_v59, %v4913_v51 }
 0x274   :  { %v3098_v30 = vcombine.low %v1553_v62, %v1567_v12  ;;  %v4432_v10 = vcombine.high %v1553_v62, %v1567_v12  ;;  %4048 = vperm.xlu1 %4581, %v2803_v13   ;;  %v1798_v14 = vrot.slane %v1782_v37, %v4913_v51  ;;  %v1824_v31 = vcombine.high %v848_v44, %v848_v44 }
 0x275   :  { %v1791_v19 = vcombine.high %v1789_v54, %v1789_v54  ;;  %v1812_v29 = vrot.slane %v1790_v27, %v4913_v51  ;;  %v1831_v11 = vrot.slane %v848_v44, %v4913_v51  ;;  %v2681_v52 = vrot.slane %v2659_v38, %v4913_v51 }
 0x276   :  { %v6109_v59 = vcombine.high %v5054_v5, %v5043_v61  ;;  %v2689_v12 = vcombine.low %v5083_v47, %v5086_v6  ;;  %v1838_v27 = vrot.slane %v1824_v31, %v4913_v51  ;;  %v5327_v38 = vrot.slane %v3098_v30, %v4913_v51  ;;  %v776_v47 = vpop.xlane.xlu0 %775  ;;  %v779_v6 = vpop.xlane.xlu1 %778 }
 0x277   :  { %v5323_v13 = vrot.slane %v1791_v19, %v4913_v51  ;;  %v5330_v61 = vrot.slane %v4432_v10, %v4913_v51  ;;  %v1839_v5 = vcombine.high %v1831_v11, %v1831_v11  ;;  %v3343_v37 = vcombine.low %v1798_v14, %v1812_v29 }
 0x278   :  { %v2688_v34 = vrot.slane %v6109_v59, %v4913_v51  ;;  %v5333_v59 = vrot.slane %v1789_v54, %v4913_v51  ;;  %v4442_v62 = vcombine.high %v1798_v14, %v1812_v29  ;;  %v1847_v19 = vrot.slane %v1831_v11, %v4913_v51 }
 0x279   :  { %v1840_v56 = vcombine.high %v1838_v27, %v1838_v27  ;;  %v1861_v31 = vrot.slane %v1839_v5, %v4913_v51  ;;  %v2697_v30 = vrot.slane %v2689_v12, %v4913_v51  ;;  %v845_v54 = vadd.f32 %v4910_v50, %v776_v47 }
 0x27a   :  { %v2690_v44 = vcombine.low %v2681_v52, %v2688_v34  ;;  %v846_v34 = vadd.f32 %v4910_v50, %v779_v6  ;;  %v6110_v11 = vcombine.low %v5029_v7, %v5007_v24  ;;  %v6111_v5 = vcombine.high %v5029_v7, %v5007_v24 }
 0x27b   :  { %v5346_v14 = vrot.slane %v1840_v56, %v4913_v51  ;;  %v1677_v10 = vcombine.high %v845_v54, %v845_v54  ;;  %v1684_v52 = vrot.slane %v845_v54, %v4913_v51  ;;  %v5359_v56 = vrot.slane %v3343_v37, %v4913_v51 }
 0x27c   :  { %v2704_v49 = vrot.slane %v2690_v44, %v4913_v51  ;;  %v2828_v12 = vrot.slane %v6110_v11, %v4913_v51  ;;  %v2835_v44 = vrot.slane %v6111_v5, %v4913_v51  ;;  %v1726_v47 = vcombine.high %v846_v34, %v846_v34 }
 0x27d   :  { %v1733_v6 = vrot.slane %v846_v34, %v4913_v51  ;;  %v3392_v11 = vcombine.low %v1847_v19, %v1861_v31  ;;  %v4444_v35 = vcombine.high %v1847_v19, %v1861_v31  ;;  %v1691_v24 = vrot.slane %v1677_v10, %v4913_v51  ;;  %v794_v19 = vpop.xlane.xlu0 %793 }
 0x27e   :  { %v2705_v29 = vcombine.low %v2697_v30, %v2704_v49  ;;  %v5362_v49 = vrot.slane %v4442_v62, %v4913_v51  ;;  %v5365_v30 = vrot.slane %v1838_v27, %v4913_v51  ;;  %v1692_v7 = vcombine.high %v1684_v52, %v1684_v52 }
 0x27f   :  { %v1740_v54 = vrot.slane %v1726_v47, %v4913_v51  ;;  %v1741_v5 = vcombine.high %v1733_v6, %v1733_v6  ;;  %v2836_v37 = vcombine.low %v5048_v3, %v5051_v4  ;;  %v2837_v62 = vcombine.low %v2828_v12, %v2835_v44 }
 0x280   :  { %4042 = vperm.xlu1 %4581, %v2705_v29   ;;  %v1693_v2 = vcombine.high %v1691_v24, %v1691_v24  ;;  %v1700_v27 = vrot.slane %v1684_v52, %v4913_v51  ;;  %v1714_v8 = vrot.slane %v1692_v7, %v4913_v51  ;;  %v5381_v36 = vrot.slane %v3392_v11, %v4913_v51 }
 0x281   :  { %v1742_v29 = vcombine.high %v1740_v54, %v1740_v54  ;;  %v1763_v10 = vrot.slane %v1741_v5, %v4913_v51  ;;  %v2844_v47 = vrot.slane %v2836_v37, %v4913_v51  ;;  %v2851_v34 = vrot.slane %v2837_v62, %v4913_v51  ;;  %v797_v37 = vpop.xlane.xlu1 %796 }
 0x282   :  { %v5384_v3 = vrot.slane %v1693_v2, %v4913_v51  ;;  %v3245_v4 = vcombine.low %v1700_v27, %v1714_v8  ;;  %v1749_v52 = vrot.slane %v1733_v6, %v4913_v51  ;;  %v5388_v12 = vrot.slane %v4444_v35, %v4913_v51 }
 0x283   :  { %v5391_v44 = vrot.slane %v1691_v24, %v4913_v51  ;;  %v2852_v7 = vcombine.low %v2844_v47, %v2851_v34  ;;  %v851_v5 = vadd.f32 %v4910_v50, %v794_v19  ;;  %v4438_v62 = vcombine.high %v1700_v27, %v1714_v8 }
 0x284   :  { %v5395_v11 = vrot.slane %v1740_v54, %v4913_v51  ;;  %v5398_v2 = vrot.slane %v1742_v29, %v4913_v51  ;;  %v3294_v31 = vcombine.low %v1749_v52, %v1763_v10  ;;  %v5405_v24 = vrot.slane %v3245_v4, %v4913_v51 }
 0x285   :  { %v4440_v34 = vcombine.high %v1749_v52, %v1763_v10  ;;  %4051 = vperm.xlu1 %4581, %v2852_v7   ;;  %v1971_v19 = vcombine.high %v851_v5, %v851_v5  ;;  %v1978_v8 = vrot.slane %v851_v5, %v4913_v51  ;;  %v852_v54 = vadd.f32 %v4910_v50, %v797_v37 }
 0x286   :  { %v6112_v27 = vcombine.low %v5194_v25, %v5185_v48  ;;  %v6113_v47 = vcombine.high %v5194_v25, %v5185_v48  ;;  %v2934_v4 = vcombine.low %v5217_v21, %v5227_v33  ;;  %v6114_v10 = vcombine.low %v5079_v16, %v5071_v18 }
 0x287   :  { %v6115_v7 = vcombine.high %v5079_v16, %v5071_v18  ;;  %v5428_v37 = vrot.slane %v4438_v62, %v4913_v51  ;;  %v1986_v48 = vcombine.high %v1978_v8, %v1978_v8  ;;  %v2020_v25 = vcombine.high %v852_v54, %v852_v54  ;;  %v788_v62 = vpop.xlane.xlu0 %787 }
 0x288   :  { %v2926_v29 = vrot.slane %v6112_v27, %v4913_v51  ;;  %v2933_v35 = vrot.slane %v6113_v47, %v4913_v51  ;;  %v2730_v52 = vrot.slane %v6114_v10, %v4913_v51  ;;  %v1985_v27 = vrot.slane %v1971_v19, %v4913_v51 }
 0x289   :  { %v2737_v5 = vrot.slane %v6115_v7, %v4913_v51  ;;  %v1994_v33 = vrot.slane %v1978_v8, %v4913_v51  ;;  %v2027_v47 = vrot.slane %v852_v54, %v4913_v51  ;;  %v2008_v0 = vrot.slane %v1986_v48, %v4913_v51 }
 0x28a   :  { %v2935_v10 = vcombine.low %v2926_v29, %v2933_v35  ;;  %v1987_v6 = vcombine.high %v1985_v27, %v1985_v27  ;;  %v2034_v18 = vrot.slane %v2020_v25, %v4913_v51  ;;  %v2942_v16 = vrot.slane %v2934_v4, %v4913_v51 }
 0x28b   :  { %v2035_v7 = vcombine.high %v2027_v47, %v2027_v47  ;;  %v2738_v55 = vcombine.low %v5096_v57, %v5099_v22  ;;  %v2739_v21 = vcombine.low %v2730_v52, %v2737_v5  ;;  %v5444_v35 = vrot.slane %v1985_v27, %v4913_v51 }
 0x28c   :  { %v2949_v19 = vrot.slane %v2935_v10, %v4913_v51  ;;  %v5447_v54 = vrot.slane %v1987_v6, %v4913_v51  ;;  %v3539_v29 = vcombine.low %v1994_v33, %v2008_v0  ;;  %v4450_v48 = vcombine.high %v1994_v33, %v2008_v0  ;;  %v791_v10 = vpop.xlane.xlu1 %790 }
 0x28d   :  { %v2036_v4 = vcombine.high %v2034_v18, %v2034_v18  ;;  %v2057_v25 = vrot.slane %v2035_v7, %v4913_v51  ;;  %v5451_v28 = vrot.slane %v3294_v31, %v4913_v51  ;;  %v5454_v57 = vrot.slane %v4440_v34, %v4913_v51  ;;  %v806_v7 = vpop.xlane.xlu0 %805 }
 0x28e   :  { %v2950_v63 = vcombine.low %v2942_v16, %v2949_v19  ;;  %v2043_v22 = vrot.slane %v2027_v47, %v4913_v51  ;;  %v5458_v52 = vrot.slane %v2034_v18, %v4913_v51  ;;  %v2746_v5 = vrot.slane %v2738_v55, %v4913_v51 }
 0x28f   :  { %6116 = vst [vmem:[#allocation15_spill] sm:$0xff] %v5451_v28  ;;  %v2753_v31 = vrot.slane %v2739_v21, %v4913_v51  ;;  %v849_v27 = vadd.f32 %v4910_v50, %v788_v62  ;;  %v850_v34 = vadd.f32 %v4910_v50, %v791_v10  ;;  %v6117_v33 = vcombine.low %v5089_v26, %v5074_v1 }
 0x290   :  { %4057 = vperm.xlu0 %4582, %v2950_v63   ;;  %v6118_v18 = vcombine.high %v5089_v26, %v5074_v1  ;;  %v5477_v63 = vrot.slane %v3539_v29, %v4913_v51  ;;  %v5480_v55 = vrot.slane %v4450_v48, %v4913_v51  ;;  %v5483_v21 = vrot.slane %v2036_v4, %v4913_v51 }
 0x291   :  { %v2975_v47 = vrot.slane %v6117_v33, %v4913_v51  ;;  %v3588_v62 = vcombine.low %v2043_v22, %v2057_v25  ;;  %v2754_v19 = vcombine.low %v2746_v5, %v2753_v31  ;;  %v1873_v10 = vcombine.high %v849_v27, %v849_v27 }
 0x292   :  { %v2982_v16 = vrot.slane %v6118_v18, %v4913_v51  ;;  %v1880_v33 = vrot.slane %v849_v27, %v4913_v51  ;;  %v1922_v8 = vcombine.high %v850_v34, %v850_v34  ;;  %v1929_v0 = vrot.slane %v850_v34, %v4913_v51 }
 0x293   :  { %v2983_v1 = vcombine.low %v5126_v9, %v5130_v46  ;;  %v855_v29 = vadd.f32 %v4910_v50, %v806_v7  ;;  %v4452_v18 = vcombine.high %v2043_v22, %v2057_v25  ;;  %4045 = vperm.xlu1 %4581, %v2754_v19   ;;  %v1887_v48 = vrot.slane %v1873_v10, %v4913_v51 }
 0x294   :  { %v2984_v26 = vcombine.low %v2975_v47, %v2982_v16  ;;  %v1888_v4 = vcombine.high %v1880_v33, %v1880_v33  ;;  %v1936_v6 = vrot.slane %v1922_v8, %v4913_v51  ;;  %v1937_v31 = vcombine.high %v1929_v0, %v1929_v0 }
 0x295   :  { %v2991_v27 = vrot.slane %v2983_v1, %v4913_v51  ;;  %v1889_v28 = vcombine.high %v1887_v48, %v1887_v48  ;;  %v1896_v9 = vrot.slane %v1880_v33, %v4913_v51  ;;  %v1945_v22 = vrot.slane %v1929_v0, %v4913_v51 }
 0x296   :  { %v2998_v34 = vrot.slane %v2984_v26, %v4913_v51  ;;  %v1910_v46 = vrot.slane %v1888_v4, %v4913_v51  ;;  %v1938_v25 = vcombine.high %v1936_v6, %v1936_v6  ;;  %v1959_v47 = vrot.slane %v1937_v31, %v4913_v51 }
 0x297   :  { %v2167_v8 = vcombine.high %v855_v29, %v855_v29  ;;  %v5501_v7 = vrot.slane %v1889_v28, %v4913_v51  ;;  %v5509_v26 = vrot.slane %v1887_v48, %v4913_v51  ;;  %v2174_v0 = vrot.slane %v855_v29, %v4913_v51 }
 0x298   :  { %v2999_v16 = vcombine.low %v2991_v27, %v2998_v34  ;;  %v3441_v19 = vcombine.low %v1896_v9, %v1910_v46  ;;  %v4446_v10 = vcombine.high %v1896_v9, %v1910_v46  ;;  %v5504_v1 = vrot.slane %v1938_v25, %v4913_v51  ;;  %v809_v9 = vpop.xlane.xlu1 %808 }
 0x299   :  { %v2181_v4 = vrot.slane %v2167_v8, %v4913_v51  ;;  %v5514_v31 = vrot.slane %v3588_v62, %v4913_v51  ;;  %v5517_v28 = vrot.slane %v4452_v18, %v4913_v51  ;;  %v5520_v27 = vrot.slane %v1936_v6, %v4913_v51  ;;  %v800_v62 = vpop.xlane.xlu0 %799 }
 0x29a   :  { %6119 = vst [vmem:[#allocation16_spill] sm:$0xff] %v5504_v1  ;;  %4060 = vperm.xlu1 %4581, %v2999_v16   ;;  %v3490_v34 = vcombine.low %v1945_v22, %v1959_v47  ;;  %v5527_v29 = vrot.slane %v3441_v19, %v4913_v51  ;;  %v4448_v25 = vcombine.high %v1945_v22, %v1959_v47 }
 0x29b   :  { %6120 = vst [vmem:[#allocation17_spill] sm:$0xff] %v5514_v31  ;;  %6121 = vst [vmem:[#allocation18_spill] sm:$0xff] %v5520_v27  ;;  %v5530_v16 = vrot.slane %v4446_v10, %v4913_v51  ;;  %v2182_v18 = vcombine.high %v2174_v0, %v2174_v0  ;;  %v2183_v8 = vcombine.high %v2181_v4, %v2181_v4 }
 0x29c   :  { %v856_v33 = vadd.f32 %v4910_v50, %v809_v9  ;;  %v6122_v5 = vcombine.low %v5169_v23, %v5151_v41  ;;  %v6123_v22 = vcombine.high %v5169_v23, %v5151_v41  ;;  %v2885_v19 = vcombine.low %v5182_v53, %v5191_v42 }
 0x29d   :  { %v5548_v6 = vrot.slane %v3490_v34, %v4913_v51  ;;  %v2204_v9 = vrot.slane %v2182_v18, %v4913_v51  ;;  %v853_v48 = vadd.f32 %v4910_v50, %v800_v62  ;;  %v5558_v53 = vrot.slane %v2181_v4, %v4913_v51 }
 0x29e   :  { %v2877_v46 = vrot.slane %v6122_v5, %v4913_v51  ;;  %v2884_v47 = vrot.slane %v6123_v22, %v4913_v51  ;;  %v5553_v5 = vrot.slane %v4448_v25, %v4913_v51  ;;  %v2216_v31 = vcombine.high %v856_v33, %v856_v33 }
 0x29f   :  { %6124 = vst [vmem:[#allocation19_spill] sm:$0xff] %v5548_v6  ;;  %v2223_v41 = vrot.slane %v856_v33, %v4913_v51  ;;  %v2190_v22 = vrot.slane %v2174_v0, %v4913_v51  ;;  %v5561_v42 = vrot.slane %v2183_v8, %v4913_v51  ;;  %v6126_v34 = vcombine.low %v5333_v59, %v5323_v13 }
 0x2a0   :  { %6125 = vst [vmem:[#allocation20_spill] sm:$0xff] %v5553_v5  ;;  %v2886_v23 = vcombine.low %v2877_v46, %v2884_v47  ;;  %v2230_v25 = vrot.slane %v2216_v31, %v4913_v51  ;;  %v2893_v18 = vrot.slane %v2885_v19, %v4913_v51  ;;  %v2069_v47 = vcombine.high %v853_v48, %v853_v48 }
 0x2a1   :  { %v3367_v50 = vrot.slane %v6126_v34, %v4913_v51  ;;  %v2231_v62 = vcombine.high %v2223_v41, %v2223_v41  ;;  %v3735_v46 = vcombine.low %v2190_v22, %v2204_v9  ;;  %v4458_v0 = vcombine.high %v2190_v22, %v2204_v9  ;;  %v803_v34 = vpop.xlane.xlu1 %802 }
 0x2a2   :  { %v2900_v33 = vrot.slane %v2886_v23, %v4913_v51  ;;  %v2076_v4 = vrot.slane %v853_v48, %v4913_v51  ;;  %v2232_v10 = vcombine.high %v2230_v25, %v2230_v25  ;;  %v2239_v8 = vrot.slane %v2223_v41, %v4913_v51 }
 0x2a3   :  { %v2253_v6 = vrot.slane %v2231_v62, %v4913_v51  ;;  %v2083_v31 = vrot.slane %v2069_v47, %v4913_v51  ;;  %v6127_v19 = vcombine.high %v5333_v59, %v5323_v13  ;;  %v5581_v23 = vrot.slane %v2230_v25, %v4913_v51  ;;  %v5607_v25 = vld [vmem:[#allocation2] ss:$0 sm:$0xff] }
 0x2a4   :  { %v2901_v5 = vcombine.low %v2893_v18, %v2900_v33  ;;  %v2084_v1 = vcombine.high %v2076_v4, %v2076_v4  ;;  %v5584_v48 = vrot.slane %v2232_v10, %v4913_v51  ;;  %v3375_v22 = vcombine.low %v5359_v56, %v5362_v49 }
 0x2a5   :  { %v3374_v9 = vrot.slane %v6127_v19, %v4913_v51  ;;  %v3784_v41 = vcombine.low %v2239_v8, %v2253_v6  ;;  %v4460_v62 = vcombine.high %v2239_v8, %v2253_v6  ;;  %v2085_v18 = vcombine.high %v2083_v31, %v2083_v31 }
 0x2a6   :  { %4054 = vperm.xlu1 %4581, %v2901_v5   ;;  %v2106_v33 = vrot.slane %v2084_v1, %v4913_v51  ;;  %v5592_v59 = vrot.slane %v3735_v46, %v4913_v51  ;;  %v5595_v10 = vrot.slane %v4458_v0, %v4913_v51  ;;  %v2092_v5 = vrot.slane %v2076_v4, %v4913_v51 }
 0x2a7   :  { %v3376_v47 = vcombine.low %v3367_v50, %v3374_v9  ;;  %v5603_v1 = vrot.slane %v2083_v31, %v4913_v51  ;;  %v3383_v6 = vrot.slane %v3375_v22, %v4913_v51  ;;  %v854_v46 = vadd.f32 %v5607_v25, %v803_v34  ;;  %v812_v31 = vpop.xlane.xlu0 %811 }
 0x2a8   :  { %v6128_v0 = vcombine.low %v5133_v17, %v5115_v60  ;;  %v6129_v8 = vcombine.high %v5133_v17, %v5115_v60  ;;  %v5619_v9 = vrot.slane %v3784_v41, %v4913_v51  ;;  %v5622_v22 = vrot.slane %v4460_v62, %v4913_v51 }
 0x2a9   :  { %v3390_v50 = vrot.slane %v3376_v47, %v4913_v51  ;;  %v5625_v47 = vrot.slane %v2085_v18, %v4913_v51  ;;  %v3637_v34 = vcombine.low %v2092_v5, %v2106_v33  ;;  %v2118_v56 = vcombine.high %v854_v46, %v854_v46 }
 0x2aa   :  { %v3024_v4 = vrot.slane %v6128_v0, %v4913_v51  ;;  %v3031_v19 = vrot.slane %v6129_v8, %v4913_v51  ;;  %v2125_v0 = vrot.slane %v854_v46, %v4913_v51  ;;  %v3032_v13 = vcombine.low %v5163_v45, %v5166_v58 }
 0x2ab   :  { %v3391_v49 = vcombine.low %v3383_v6, %v3390_v50  ;;  %v857_v17 = vadd.f32 %v5607_v25, %v812_v31  ;;  %v6130_v41 = vcombine.low %v5391_v44, %v5384_v3  ;;  %v6131_v18 = vcombine.high %v5391_v44, %v5384_v3 }
 0x2ac   :  { %v3033_v60 = vcombine.low %v3024_v4, %v3031_v19  ;;  %v4454_v6 = vcombine.high %v2092_v5, %v2106_v33  ;;  %v2132_v50 = vrot.slane %v2118_v56, %v4913_v51  ;;  %v2133_v46 = vcombine.high %v2125_v0, %v2125_v0 }
 0x2ad   :  { %v3269_v62 = vrot.slane %v6130_v41, %v4913_v51  ;;  %v3276_v8 = vrot.slane %v6131_v18, %v4913_v51  ;;  %4084 = vperm.xlu0 %4582, %v3391_v49   ;;  %v3040_v45 = vrot.slane %v3032_v13, %v4913_v51  ;;  %v2265_v4 = vcombine.high %v857_v17, %v857_v17 }
 0x2ae   :  { %v3047_v58 = vrot.slane %v3033_v60, %v4913_v51  ;;  %v2272_v19 = vrot.slane %v857_v17, %v4913_v51  ;;  %v3277_v31 = vcombine.low %v5405_v24, %v5428_v37  ;;  %v2134_v41 = vcombine.high %v2132_v50, %v2132_v50 }
 0x2af   :  { %v2141_v27 = vrot.slane %v2125_v0, %v4913_v51  ;;  %v2155_v3 = vrot.slane %v2133_v46, %v4913_v51  ;;  %v3278_v44 = vcombine.low %v3269_v62, %v3276_v8  ;;  %v3639_v33 = vcombine.low %v5603_v1, %v5625_v47  ;;  %v821_v8 = vpop.xlane.xlu1 %820 }
 0x2b0   :  { %v3048_v5 = vcombine.low %v3040_v45, %v3047_v58  ;;  %v2279_v13 = vrot.slane %v2265_v4, %v4913_v51  ;;  %v2280_v56 = vcombine.high %v2272_v19, %v2272_v19  ;;  %v5651_v49 = vrot.slane %v2132_v50, %v4913_v51 }
 0x2b1   :  { %v5654_v60 = vrot.slane %v2134_v41, %v4913_v51  ;;  %v3686_v24 = vcombine.low %v2141_v27, %v2155_v3  ;;  %v4456_v37 = vcombine.high %v2141_v27, %v2155_v3  ;;  %v3285_v62 = vrot.slane %v3277_v31, %v4913_v51 }
 0x2b2   :  { %4063 = vperm.xlu1 %4581, %v3048_v5   ;;  %v2281_v0 = vcombine.high %v2279_v13, %v2279_v13  ;;  %v2302_v17 = vrot.slane %v2280_v56, %v4913_v51  ;;  %v3292_v18 = vrot.slane %v3278_v44, %v4913_v51  ;;  %v4455_v46 = vcombine.high %v5603_v1, %v5625_v47  ;;  %v818_v56 = vpop.xlane.xlu0 %817 }
 0x2b3   :  { %v5662_v50 = vrot.slane %v3637_v34, %v4913_v51  ;;  %v5665_v45 = vrot.slane %v4454_v6, %v4913_v51  ;;  %v2288_v27 = vrot.slane %v2272_v19, %v4913_v51  ;;  %v5673_v31 = vrot.slane %v2279_v13, %v4913_v51  ;;  %v815_v58 = vpop.xlane.xlu1 %814 }
 0x2b4   :  { %v3293_v41 = vcombine.low %v3285_v62, %v3292_v18  ;;  %v860_v3 = vadd.f32 %v5607_v25, %v821_v8  ;;  %v6132_v34 = vcombine.low %v5277_v43, %v5270_v32  ;;  %v6133_v19 = vcombine.high %v5277_v43, %v5270_v32 }
 0x2b5   :  { %v3081_v5 = vcombine.low %v5300_v40, %v5303_v20  ;;  %v5687_v13 = vrot.slane %v3686_v24, %v4913_v51  ;;  %v5690_v62 = vrot.slane %v4456_v37, %v4913_v51  ;;  %v5693_v18 = vrot.slane %v2281_v0, %v4913_v51 }
 0x2b6   :  { %v3073_v6 = vrot.slane %v6132_v34, %v4913_v51  ;;  %v3080_v44 = vrot.slane %v6133_v19, %v4913_v51  ;;  %v3833_v8 = vcombine.low %v2288_v27, %v2302_v17  ;;  %4078 = vperm.xlu0 %4582, %v3293_v41   ;;  %v4462_v34 = vcombine.high %v2288_v27, %v2302_v17 }
 0x2b7   :  { %v2412_v4 = vcombine.high %v860_v3, %v860_v3  ;;  %v2419_v32 = vrot.slane %v860_v3, %v4913_v51  ;;  %v859_v19 = vadd.f32 %v5607_v25, %v818_v56  ;;  %v6134_v20 = vcombine.low %v5444_v35, %v5447_v54 }
 0x2b8   :  { %v3082_v43 = vcombine.low %v3073_v6, %v3080_v44  ;;  %v6135_v24 = vcombine.high %v5444_v35, %v5447_v54  ;;  %v3571_v0 = vcombine.low %v5477_v63, %v5480_v55  ;;  %v3089_v41 = vrot.slane %v3081_v5, %v4913_v51 }
 0x2b9   :  { %v3563_v40 = vrot.slane %v6134_v20, %v4913_v51  ;;  %v2426_v17 = vrot.slane %v2412_v4, %v4913_v51  ;;  %v2427_v27 = vcombine.high %v2419_v32, %v2419_v32  ;;  %v2363_v44 = vcombine.high %v859_v19, %v859_v19 }
 0x2ba   :  { %v3570_v37 = vrot.slane %v6135_v24, %v4913_v51  ;;  %v3096_v3 = vrot.slane %v3082_v43, %v4913_v51  ;;  %v2370_v56 = vrot.slane %v859_v19, %v4913_v51  ;;  %v4463_v35 = vcombine.high %v5673_v31, %v5693_v18 }
 0x2bb   :  { %v2428_v54 = vcombine.high %v2426_v17, %v2426_v17  ;;  %v5716_v63 = vrot.slane %v2427_v27, %v4913_v51  ;;  %v2377_v4 = vrot.slane %v2363_v44, %v4913_v51  ;;  %v3579_v43 = vrot.slane %v3571_v0, %v4913_v51 }
 0x2bc   :  { %v3572_v20 = vcombine.low %v3563_v40, %v3570_v37  ;;  %v3097_v55 = vcombine.low %v3089_v41, %v3096_v3  ;;  %v2378_v5 = vcombine.high %v2370_v56, %v2370_v56  ;;  %v5722_v6 = vrot.slane %v3833_v8, %v4913_v51 }
 0x2bd   :  { %v5725_v19 = vrot.slane %v2419_v32, %v4913_v51  ;;  %v2386_v40 = vrot.slane %v2370_v56, %v4913_v51  ;;  %v858_v37 = vadd.f32 %v5607_v25, %v815_v58  ;;  %v5730_v27 = vrot.slane %v2428_v54, %v4913_v51 }
 0x2be   :  { %v3586_v24 = vrot.slane %v3572_v20, %v4913_v51  ;;  %4066 = vperm.xlu1 %4581, %v3097_v55   ;;  %v2379_v41 = vcombine.high %v2377_v4, %v2377_v4  ;;  %v2400_v3 = vrot.slane %v2378_v5, %v4913_v51  ;;  %v5734_v44 = vrot.slane %v4462_v34, %v4913_v51 }
 0x2bf   :  { %v5737_v8 = vrot.slane %v2426_v17, %v4913_v51  ;;  %v3980_v32 = vcombine.low %v5725_v19, %v5716_v63  ;;  %v5744_v25 = vrot.slane %v2377_v4, %v4913_v51  ;;  %v2314_v54 = vcombine.high %v858_v37, %v858_v37 }
 0x2c0   :  { %v3587_v0 = vcombine.low %v3579_v43, %v3586_v24  ;;  %v5747_v58 = vrot.slane %v2379_v41, %v4913_v51  ;;  %v3931_v20 = vcombine.low %v2386_v40, %v2400_v3  ;;  %v2321_v34 = vrot.slane %v858_v37, %v4913_v51 }
 0x2c1   :  { %v6136_v17 = vcombine.low %v5292_v39, %v5295_v15  ;;  %v6137_v5 = vcombine.high %v5292_v39, %v5295_v15  ;;  %v3130_v4 = vcombine.low %v5327_v38, %v5330_v61  ;;  %v4466_v37 = vcombine.high %v2386_v40, %v2400_v3 }
 0x2c2   :  { %4096 = vperm.xlu0 %4582, %v3587_v0   ;;  %v3933_v0 = vcombine.low %v5744_v25, %v5747_v58  ;;  %v2328_v56 = vrot.slane %v2314_v54, %v4913_v51  ;;  %v2329_v39 = vcombine.high %v2321_v34, %v2321_v34  ;;  %v6138_v38 = vcombine.low %v5509_v26, %v5501_v7 }
 0x2c3   :  { %v3122_v55 = vrot.slane %v6136_v17, %v4913_v51  ;;  %v3129_v43 = vrot.slane %v6137_v5, %v4913_v51  ;;  %v4467_v17 = vcombine.high %v5744_v25, %v5747_v58  ;;  %v5770_v5 = vrot.slane %v3931_v20, %v4913_v51 }
 0x2c4   :  { %v3465_v61 = vrot.slane %v6138_v38, %v4913_v51  ;;  %v6139_v40 = vcombine.high %v5509_v26, %v5501_v7  ;;  %v3473_v41 = vcombine.low %v5527_v29, %v5530_v16  ;;  %v2330_v24 = vcombine.high %v2328_v56, %v2328_v56 }
 0x2c5   :  { %v3131_v15 = vcombine.low %v3122_v55, %v3129_v43  ;;  %v5783_v54 = vrot.slane %v2329_v39, %v4913_v51  ;;  %v3138_v20 = vrot.slane %v3130_v4, %v4913_v51  ;;  %v5788_v43 = vrot.slane %v2321_v34, %v4913_v51 }
 0x2c6   :  { %v3472_v3 = vrot.slane %v6139_v40, %v4913_v51  ;;  %v6140_v7 = vcombine.low %v5365_v30, %v5346_v14  ;;  %v6141_v29 = vcombine.high %v5365_v30, %v5346_v14  ;;  %v5799_v39 = vrot.slane %v2328_v56, %v4913_v51 }
 0x2c7   :  { %v3145_v55 = vrot.slane %v3131_v15, %v4913_v51  ;;  %v5802_v4 = vrot.slane %v2330_v24, %v4913_v51  ;;  %v3481_v34 = vrot.slane %v3473_v41, %v4913_v51  ;;  %v3424_v40 = vcombine.low %v5381_v36, %v5388_v12 }
 0x2c8   :  { %v3474_v38 = vcombine.low %v3465_v61, %v3472_v3  ;;  %v3416_v26 = vrot.slane %v6140_v7, %v4913_v51  ;;  %v3423_v16 = vrot.slane %v6141_v29, %v4913_v51  ;;  %v6142_v14 = vcombine.low %v5558_v53, %v5561_v42 }
 0x2c9   :  { %v3146_v15 = vcombine.low %v3138_v20, %v3145_v55  ;;  %v5813_v56 = vrot.slane %v4466_v37, %v4913_v51  ;;  %v3882_v24 = vcombine.low %v5788_v43, %v5783_v54  ;;  %v4464_v41 = vcombine.high %v5788_v43, %v5783_v54  ;;  %v6166_v54 = vld [vmem:[#allocation11_spill] sm:$0xff] }
 0x2ca   :  { %v3488_v61 = vrot.slane %v3474_v38, %v4913_v51  ;;  %v3425_v3 = vcombine.low %v3416_v26, %v3423_v16  ;;  %v3759_v30 = vrot.slane %v6142_v14, %v4913_v51  ;;  %v3884_v20 = vcombine.low %v5799_v39, %v5802_v4 }
 0x2cb   :  { %4069 = vperm.xlu1 %4581, %v3146_v15   ;;  %v3432_v12 = vrot.slane %v3424_v40, %v4913_v51  ;;  %v6143_v37 = vcombine.high %v5558_v53, %v5561_v42  ;;  %v3767_v7 = vcombine.low %v5592_v59, %v5595_v10  ;;  %v6144_v26 = vcombine.low %v5395_v11, %v5398_v2 }
 0x2cc   :  { %v3489_v36 = vcombine.low %v3481_v34, %v3488_v61  ;;  %v3439_v55 = vrot.slane %v3425_v3, %v4913_v51  ;;  %v6145_v16 = vcombine.high %v5395_v11, %v5398_v2  ;;  %v6146_v34 = vld [vmem:[#allocation15_spill] sm:$0xff]  ;;  %v3661_v42 = vrot.slane %v3639_v33, %v4913_v51 }
 0x2cd   :  { %v3766_v38 = vrot.slane %v6143_v37, %v4913_v51  ;;  %v3318_v29 = vrot.slane %v6144_v26, %v4913_v51  ;;  %v3326_v61 = vcombine.low %v6146_v34, %v5454_v57  ;;  %v3668_v59 = vrot.slane %v4455_v46, %v4913_v51 }
 0x2ce   :  { %v3325_v15 = vrot.slane %v6145_v16, %v4913_v51  ;;  %4090 = vperm.xlu0 %4582, %v3489_v36   ;;  %v3440_v40 = vcombine.low %v3432_v12, %v3439_v55  ;;  %v3775_v10 = vrot.slane %v3767_v7, %v4913_v51  ;;  %v3669_v57 = vcombine.low %v5662_v50, %v5665_v45  ;;  %v6149_v50 = vld [vmem:[#allocation17_spill] sm:$0xff]  ;;  %v6152_v16 = vld [vmem:[#allocation18_spill] sm:$0xff] }
 0x2cf   :  { %v3768_v53 = vcombine.low %v3759_v30, %v3766_v38  ;;  %v3334_v2 = vrot.slane %v3326_v61, %v4913_v51  ;;  %v3670_v14 = vcombine.low %v3661_v42, %v3668_v59  ;;  %v6147_v33 = vcombine.low %v5458_v52, %v5483_v21 }
 0x2d0   :  { %v3327_v11 = vcombine.low %v3318_v29, %v3325_v15  ;;  %4087 = vperm.xlu1 %4581, %v3440_v40   ;;  %v6148_v1 = vcombine.high %v5458_v52, %v5483_v21  ;;  %v3677_v36 = vrot.slane %v3669_v57, %v4913_v51  ;;  %v3620_v45 = vcombine.low %v6149_v50, %v5517_v28  ;;  %v6153_v15 = vld [vmem:[#allocation16_spill] sm:$0xff] }
 0x2d1   :  { %v3782_v3 = vrot.slane %v3768_v53, %v4913_v51  ;;  %v3612_v30 = vrot.slane %v6147_v33, %v4913_v51  ;;  %v6150_v12 = vcombine.low %v5581_v23, %v5584_v48  ;;  %v3684_v38 = vrot.slane %v3670_v14, %v4913_v51 }
 0x2d2   :  { %v3619_v47 = vrot.slane %v6148_v1, %v4913_v51  ;;  %v3341_v46 = vrot.slane %v3327_v11, %v4913_v51  ;;  %v6151_v52 = vcombine.high %v5581_v23, %v5584_v48  ;;  %v4465_v26 = vcombine.high %v5799_v39, %v5802_v4  ;;  %v6167_v39 = vld [vmem:[#allocation9_spill] sm:$0xff]  ;;  %v6168_v4 = vld [vmem:[#allocation10_spill] sm:$0xff] }
 0x2d3   :  { %v3808_v55 = vrot.slane %v6150_v12, %v4913_v51  ;;  %v3783_v37 = vcombine.low %v3775_v10, %v3782_v3  ;;  %v3816_v28 = vcombine.low %v5619_v9, %v5622_v22  ;;  %v6154_v34 = vcombine.low %v6152_v16, %v6153_v15  ;;  %v6156_v10 = vld [vmem:[#allocation20_spill] sm:$0xff]  ;;  %v6157_v9 = vld [vmem:[#allocation19_spill] sm:$0xff] }
 0x2d4   :  { %v3621_v7 = vcombine.low %v3612_v30, %v3619_v47  ;;  %v3815_v21 = vrot.slane %v6151_v52, %v4913_v51  ;;  %v3342_v29 = vcombine.low %v3334_v2, %v3341_v46  ;;  %v3685_v40 = vcombine.low %v3677_v36, %v3684_v38 }
 0x2d5   :  { %v3514_v61 = vrot.slane %v6154_v34, %v4913_v51  ;;  %4108 = vperm.xlu0 %4582, %v3783_v37   ;;  %v6155_v23 = vcombine.high %v6152_v16, %v6153_v15  ;;  %v3628_v59 = vrot.slane %v3620_v45, %v4913_v51  ;;  %v3522_v22 = vcombine.low %v6157_v9, %v6156_v10  ;;  %v6165_v15 = vld [vmem:[#allocation12_spill] sm:$0xff] }
 0x2d6   :  { %v3635_v53 = vrot.slane %v3621_v7, %v4913_v51  ;;  %v3817_v42 = vcombine.low %v3808_v55, %v3815_v21  ;;  %4081 = vperm.xlu1 %4581, %v3342_v29   ;;  %v3955_v11 = vrot.slane %v3933_v0, %v4913_v51  ;;  %v3962_v2 = vrot.slane %v4467_v17, %v4913_v51 }
 0x2d7   :  { %v3521_v48 = vrot.slane %v6155_v23, %v4913_v51  ;;  %v3892_v57 = vrot.slane %v3882_v24, %v4913_v51  ;;  %v3963_v33 = vcombine.low %v5770_v5, %v5813_v56  ;;  %v6158_v47 = vcombine.low %v5651_v49, %v5654_v60 }
 0x2d8   :  { %v3831_v3 = vrot.slane %v3817_v42, %v4913_v51  ;;  %v3636_v30 = vcombine.low %v3628_v59, %v3635_v53  ;;  %v3964_v1 = vcombine.low %v3955_v11, %v3962_v2  ;;  %v6159_v25 = vcombine.high %v5651_v49, %v5654_v60 }
 0x2d9   :  { %v3523_v14 = vcombine.low %v3514_v61, %v3521_v48  ;;  %v3710_v0 = vrot.slane %v6158_v47, %v4913_v51  ;;  %4102 = vperm.xlu0 %4582, %v3685_v40   ;;  %v3824_v17 = vrot.slane %v3816_v28, %v4913_v51  ;;  %v3530_v24 = vrot.slane %v3522_v22, %v4913_v51 }
 0x2da   :  { %v3717_v58 = vrot.slane %v6159_v25, %v4913_v51  ;;  %v3718_v5 = vcombine.low %v5687_v13, %v5690_v62  ;;  %4099 = vperm.xlu1 %4581, %v3636_v30   ;;  %v3978_v56 = vrot.slane %v3964_v1, %v4913_v51  ;;  %v6160_v50 = vcombine.low %v5673_v31, %v5693_v18  ;;  %v6161_v13 = vld [vmem:[#allocation8_spill] sm:$0xff]  ;;  %v6162_v62 = vld [vmem:[#allocation7_spill] sm:$0xff] }
 0x2db   :  { %v3537_v46 = vrot.slane %v3523_v14, %v4913_v51  ;;  %v3864_v60 = vrot.slane %v4463_v35, %v4913_v51  ;;  %v3832_v45 = vcombine.low %v3824_v17, %v3831_v3  ;;  %v3971_v55 = vrot.slane %v3963_v33, %v4913_v51  ;;  %v6175_v14 = vld [vmem:[#allocation13_spill] sm:$0xff] }
 0x2dc   :  { %v3719_v36 = vcombine.low %v3710_v0, %v3717_v58  ;;  %v3857_v49 = vrot.slane %v6160_v50, %v4913_v51  ;;  %v6163_v37 = vcombine.low %v6161_v13, %v6162_v62  ;;  %v3865_v52 = vcombine.low %v5722_v6, %v5734_v44 }
 0x2dd   :  { %v3538_v12 = vcombine.low %v3530_v24, %v3537_v46  ;;  %v6164_v31 = vcombine.high %v6161_v13, %v6162_v62  ;;  %v3899_v35 = vrot.slane %v4464_v41, %v4913_v51  ;;  %4111 = vperm.xlu0 %4582, %v3832_v45   ;;  %v3979_v29 = vcombine.low %v3971_v55, %v3978_v56  ;;  %v4037_v56 = vpop.permute.xlu1 %4036  ;;  %v4031_v13 = vpop.permute.xlu0 %4030 }
 0x2de   :  { %v3171_v38 = vrot.slane %v6163_v37, %v4913_v51  ;;  %v3733_v7 = vrot.slane %v3719_v36, %v4913_v51  ;;  %v3866_v21 = vcombine.low %v3857_v49, %v3864_v60  ;;  %v3906_v28 = vrot.slane %v3884_v20, %v4913_v51 }
 0x2df   :  { %v3178_v18 = vrot.slane %v6164_v31, %v4913_v51  ;;  %v3913_v6 = vrot.slane %v4465_v26, %v4913_v51  ;;  %v3990_v44 = vrot.slane %v3980_v32, %v4913_v51  ;;  %4093 = vperm.xlu1 %4581, %v3538_v12   ;;  %v3726_v16 = vrot.slane %v3718_v5, %v4913_v51 }
 0x2e0   :  { %v3179_v43 = vcombine.low %v6166_v54, %v6165_v15  ;;  %v3880_v34 = vrot.slane %v3866_v21, %v4913_v51  ;;  %v6169_v20 = vcombine.low %v6167_v39, %v6168_v4  ;;  %v6170_v40 = vcombine.high %v6167_v39, %v6168_v4 }
 0x2e1   :  { %v3180_v41 = vcombine.low %v3171_v38, %v3178_v18  ;;  %v3915_v61 = vcombine.low %v3906_v28, %v3913_v6  ;;  %v6171_v53 = vcombine.high %v5725_v19, %v5716_v63  ;;  %v3734_v23 = vcombine.low %v3726_v16, %v3733_v7  ;;  %4120 = vperm.xlu0 %4582, %v3979_v29   ;;  %v6174_v19 = vld [vmem:[#allocation14_spill] sm:$0xff]  ;;  %v4040_v36 = vpop.permute.xlu1 %4039 }
 0x2e2   :  { %v3220_v26 = vrot.slane %v6169_v20, %v4913_v51  ;;  %v3227_v32 = vrot.slane %v6170_v40, %v4913_v51  ;;  %v3873_v48 = vrot.slane %v3865_v52, %v4913_v51  ;;  %v3914_v10 = vcombine.low %v3892_v57, %v3899_v35  ;;  %v6177_v28 = vld [vmem:[#allocation6_spill] sm:$0xff] }
 0x2e3   :  { %v3997_v42 = vrot.slane %v6171_v53, %v4913_v51  ;;  %v3194_v59 = vrot.slane %v3180_v41, %v4913_v51  ;;  %v6172_v22 = vcombine.low %v5737_v8, %v5730_v27  ;;  %v6173_v2 = vcombine.high %v5737_v8, %v5730_v27  ;;  %4105 = vperm.xlu1 %4581, %v3734_v23  }
 0x2e4   :  { %v3229_v9 = vcombine.low %v3220_v26, %v3227_v32  ;;  %v3187_v63 = vrot.slane %v3179_v43, %v4913_v51  ;;  %v3228_v33 = vcombine.low %v6175_v14, %v6174_v19  ;;  %v3881_v30 = vcombine.low %v3873_v48, %v3880_v34 }
 0x2e5   :  { %v4004_v11 = vrot.slane %v6172_v22, %v4913_v51  ;;  %v4011_v3 = vrot.slane %v6173_v2, %v4913_v51  ;;  %v3929_v57 = vrot.slane %v3915_v61, %v4913_v51  ;;  %v3922_v25 = vrot.slane %v3914_v10, %v4913_v51 }
 0x2e6   :  { %v3195_v47 = vcombine.low %v3187_v63, %v3194_v59  ;;  %v3243_v0 = vrot.slane %v3229_v9, %v4913_v51  ;;  %4114 = vperm.xlu0 %4582, %v3881_v30   ;;  %v4012_v58 = vcombine.low %v3990_v44, %v3997_v42  ;;  %v3236_v27 = vrot.slane %v3228_v33, %v4913_v51 }
 0x2e7   :  { %v4013_v1 = vcombine.low %v4004_v11, %v4011_v3  ;;  %v3930_v8 = vcombine.low %v3922_v25, %v3929_v57  ;;  %v6176_v21 = vlaneseq }
 0x2e8   :  { %4072 = vperm.xlu1 %4581, %v3195_v47   ;;  %v3244_v24 = vcombine.low %v3236_v27, %v3243_v0  ;;  %v4020_v46 = vrot.slane %v4012_v58, %v4913_v51  ;;  %v4034_v50 = vpop.permute.xlu1 %4033 }
 0x2e9   :  { %v4027_v17 = vrot.slane %v4013_v1, %v4913_v51  ;;  %v5996_v31 = vand.u32 127, %v6176_v21  ;;  %vm4333_vm0 = vcmp.lt.s32.totalorder %v6176_v21, 256 }
 0x2ea   :  { %4117 = vperm.xlu0 %4582, %v3930_v8  }
 0x2eb   :  { %v4028_v5 = vcombine.low %v4020_v46, %v4027_v17  ;;  %v4131_v35 = vadd.s32 4294967288, %v5996_v31  ;;  %v4138_v16 = vadd.s32 4294967280, %v5996_v31  ;;  %v4129_v15 = vsub.s32 %v5996_v31, %v6177_v28 }
 0x2ec   :  { %4075 = vperm.xlu1 %4581, %v3244_v24   ;;  %v4145_v54 = vadd.s32 4294967272, %v5996_v31  ;;  %v4152_v43 = vadd.s32 4294967264, %v5996_v31  ;;  %v4159_v61 = vadd.s32 4294967256, %v5996_v31  ;;  %v4166_v23 = vadd.s32 4294967248, %v5996_v31 }
 0x2ed   :  { %v4134_v6 = vsub.s32 %v4131_v35, %v6177_v28  ;;  %v4141_v39 = vsub.s32 %v4138_v16, %v6177_v28  ;;  %v4130_v20 = vrot.slane %v4031_v13, %v4129_v15  ;;  %v4180_v10 = vadd.s32 4294967232, %v5996_v31 }
 0x2ee   :  { %4123 = vperm.xlu0 %4582, %v4028_v5   ;;  %v4148_v26 = vsub.s32 %v4145_v54, %v6177_v28  ;;  %v4155_v40 = vsub.s32 %v4152_v43, %v6177_v28  ;;  %v4162_v53 = vsub.s32 %v4159_v61, %v6177_v28  ;;  %v4173_v63 = vadd.s32 4294967240, %v5996_v31 }
 0x2ef   :  { %v5983_v49 = vpop.permute.xlu1 %4048  ;;  %v4135_v34 = vrot.slane %v4034_v50, %v4134_v6  ;;  %v4142_v42 = vrot.slane %v4037_v56, %v4141_v39  ;;  %v4169_v33 = vsub.s32 %v4166_v23, %v6177_v28  ;;  %v4187_v47 = vadd.s32 4294967224, %v5996_v31 }
 0x2f0   :  { %v4149_v59 = vrot.slane %v4040_v36, %v4148_v26  ;;  %v4194_v0 = vadd.s32 4294967216, %v5996_v31  ;;  %v4183_v8 = vsub.s32 %v4180_v10, %v6177_v28  ;;  %v4176_v24 = vsub.s32 %v4173_v63, %v6177_v28 }
 0x2f1   :  { %v4137_v32 = vsel %vm4136_vm1, %v4135_v34, %v4130_v20  ;;  %v4170_v5 = vrot.slane %v5983_v49, %v4169_v33  ;;  %v4190_v50 = vsub.s32 %v4187_v47, %v6177_v28  ;;  %v4201_v35 = vadd.s32 4294967208, %v5996_v31 }
 0x2f2   :  { %v4144_v22 = vsel %vm4143_vm2, %v4142_v42, %v4137_v32  ;;  %v4208_v54 = vadd.s32 4294967200, %v5996_v31  ;;  %v4229_v23 = vadd.s32 4294967176, %v5996_v31  ;;  %v4222_v10 = vadd.s32 4294967184, %v5996_v31 }
 0x2f3   :  { %v4151_v1 = vsel %vm4150_vm3, %v4149_v59, %v4144_v22 }
 0x2f4   :  { %v4211_v59 = vsub.s32 %v4208_v54, %v6177_v28 }
 0x2fb   :  { %v4043_v60 = vpop.permute.xlu1 %4042 }
 0x2fc   :  { %v4156_v11 = vrot.slane %v4043_v60, %v4155_v40  ;;  %v4197_v60 = vsub.s32 %v4194_v0, %v6177_v28 }
 0x2fe   :  { %v4158_v27 = vsel %vm4157_vm4, %v4156_v11, %v4151_v1  ;;  %v4225_v1 = vsub.s32 %v4222_v10, %v6177_v28 }
 0x300   :  { %v5985_v45 = vpop.permute.xlu1 %4051 }
 0x301   :  { %v4177_v16 = vrot.slane %v5985_v45, %v4176_v24 }
 0x30b   :  { %v5989_v62 = vpop.permute.xlu0 %4057 }
 0x30c   :  { %v4191_v32 = vrot.slane %v5989_v62, %v4190_v50 }
 0x30e   :  { %v4046_v12 = vpop.permute.xlu1 %4045 }
 0x30f   :  { %v4163_v19 = vrot.slane %v4046_v12, %v4162_v53 }
 0x311   :  { %v4165_v46 = vsel %vm4164_vm5, %v4163_v19, %v4158_v27 }
 0x315   :  { %v5987_v55 = vpop.permute.xlu1 %4060 }
 0x316   :  { %v4198_v63 = vrot.slane %v5987_v55, %v4197_v60 }
 0x321   :  { %v5991_v37 = vpop.permute.xlu1 %4054 }
 0x328   :  { %v4085_v38 = vpop.permute.xlu0 %4084 }
 0x329   :  { %v4248_v14 = vrot.slane %v4085_v38, %v4141_v39  ;;  %v4172_v38 = vsel %vm4171_vm6, %v4170_v5, %v4165_v46 }
 0x32a   :  { %v4179_v61 = vsel %vm4178_vm7, %v4177_v16, %v4172_v38 }
 0x32d   :  { %v5993_v7 = vpop.permute.xlu1 %4063 }
 0x331   :  { %v4079_v52 = vpop.permute.xlu0 %4078 }
 0x332   :  { %v4239_v2 = vrot.slane %v4079_v52, %v4129_v15  ;;  %v4184_v52 = vrot.slane %v5991_v37, %v4183_v8  ;;  %v4215_v37 = vadd.s32 4294967192, %v5996_v31  ;;  %v4232_v31 = vsub.s32 %v4229_v23, %v6177_v28 }
 0x334   :  { %v4186_v20 = vsel %vm4185_vm8, %v4184_v52, %v4179_v61 }
 0x335   :  { %v4193_v11 = vsel %vm4192_vm9, %v4191_v32, %v4186_v20 }
 0x339   :  { %v5998_v18 = vpop.permute.xlu1 %4066 }
 0x33d   :  { %v6001_v29 = vpop.permute.xlu0 %4096 }
 0x33e   :  { %v4268_v49 = vrot.slane %v6001_v29, %v4169_v33  ;;  %v4204_v29 = vsub.s32 %v4201_v35, %v6177_v28 }
 0x346   :  { %v6004_v44 = vpop.permute.xlu1 %4069 }
 0x349   :  { %v4091_v41 = vpop.permute.xlu0 %4090 }
 0x34a   :  { %v4258_v12 = vrot.slane %v4091_v41, %v4155_v40 }
 0x34b   :  { %v4088_v4 = vpop.permute.xlu1 %4087 }
 0x34c   :  { %v4253_v17 = vrot.slane %v4088_v4, %v4148_v26 }
 0x350   :  { %v6018_v48 = vpop.permute.xlu0 %4108 }
 0x351   :  { %v4082_v9 = vpop.permute.xlu1 %4081 }
 0x352   :  { %v4243_v3 = vrot.slane %v4082_v9, %v4134_v6 }
 0x354   :  { %v4244_v30 = vsel %vm4136_vm1, %v4243_v3, %v4239_v2  ;;  %v4103_v57 = vpop.permute.xlu0 %4102  ;;  %v4218_v2 = vsub.s32 %v4215_v37, %v6177_v28 }
 0x355   :  { %v4249_v25 = vsel %vm4143_vm2, %v4248_v14, %v4244_v30  ;;  %v4100_v58 = vpop.permute.xlu1 %4099  ;;  %v4278_v39 = vrot.slane %v4103_v57, %v4183_v8  ;;  %v4205_v14 = vrot.slane %v5993_v7, %v4204_v29  ;;  %v4200_v30 = vsel %vm4199_vm10, %v4198_v63, %v4193_v11 }
 0x356   :  { %v4254_v36 = vsel %vm4150_vm3, %v4253_v17, %v4249_v25  ;;  %v4273_v43 = vrot.slane %v4100_v58, %v4176_v24  ;;  %v4212_v57 = vrot.slane %v5998_v18, %v4211_v59  ;;  %v4219_v0 = vrot.slane %v6004_v44, %v4218_v2 }
 0x357   :  { %v4259_v15 = vsel %vm4157_vm4, %v4258_v12, %v4254_v36  ;;  %v4207_v7 = vsel %vm4206_vm11, %v4205_v14, %v4200_v30 }
 0x358   :  { %v4112_v56 = vpop.permute.xlu0 %4111  ;;  %v4214_v24 = vsel %vm4213_vm12, %v4212_v57, %v4207_v7 }
 0x359   :  { %v4293_v3 = vrot.slane %v4112_v56, %v4204_v29  ;;  %v4221_v5 = vsel %vm4220_vm13, %v4219_v0, %v4214_v24 }
 0x35a   :  { %v4094_v13 = vpop.permute.xlu1 %4093 }
 0x35b   :  { %v4263_v6 = vrot.slane %v4094_v13, %v4162_v53  ;;  %v4288_v53 = vrot.slane %v6018_v48, %v4197_v60 }
 0x35c   :  { %v4121_v34 = vpop.permute.xlu0 %4120 }
 0x35d   :  { %v4264_v41 = vsel %vm4164_vm5, %v4263_v6, %v4259_v15  ;;  %v4308_v46 = vrot.slane %v4121_v34, %v4225_v1 }
 0x35e   :  { %v4269_v4 = vsel %vm4171_vm6, %v4268_v49, %v4264_v41  ;;  %v4106_v45 = vpop.permute.xlu1 %4105 }
 0x35f   :  { %v4274_v26 = vsel %vm4178_vm7, %v4273_v43, %v4269_v4  ;;  %v4283_v40 = vrot.slane %v4106_v45, %v4190_v50 }
 0x360   :  { %v4279_v42 = vsel %vm4185_vm8, %v4278_v39, %v4274_v26 }
 0x361   :  { %v4284_v9 = vsel %vm4192_vm9, %v4283_v40, %v4279_v42  ;;  %v4115_v22 = vpop.permute.xlu0 %4114 }
 0x362   :  { %v4289_v62 = vsel %vm4199_vm10, %v4288_v53, %v4284_v9  ;;  %v4298_v19 = vrot.slane %v4115_v22, %v4211_v59 }
 0x363   :  { %v4073_v48 = vpop.permute.xlu1 %4072  ;;  %v4294_v33 = vsel %vm4206_vm11, %v4293_v3, %v4289_v62 }
 0x364   :  { %v4299_v58 = vsel %vm4213_vm12, %v4298_v19, %v4294_v33  ;;  %v4226_v27 = vrot.slane %v4073_v48, %v4225_v1 }
 0x365   :  { %v4118_v47 = vpop.permute.xlu0 %4117 }
 0x366   :  { %v4303_v25 = vrot.slane %v4118_v47, %v4218_v2  ;;  %v4228_v56 = vsel %vm4227_vm14, %v4226_v27, %v4221_v5 }
 0x367   :  { %v4076_v55 = vpop.permute.xlu1 %4075 }
 0x368   :  { %v4304_v8 = vsel %vm4220_vm13, %v4303_v25, %v4299_v58  ;;  %v4233_v17 = vrot.slane %v4076_v55, %v4232_v31 }
 0x369   :  { %v4124_v18 = vpop.permute.xlu0 %4123  ;;  %v4309_v36 = vsel %vm4227_vm14, %v4308_v46, %v4304_v8 }
 0x36a   :  { %v4313_v28 = vrot.slane %v4124_v18, %v4232_v31  ;;  %v4235_v50 = vsel %vm4234_vm15, %v4233_v17, %v4228_v56 }
 0x36c   :  { %v4314_v44 = vsel %vm4234_vm15, %v4313_v28, %v4309_v36 }
 0x36d   :  { %v4315_v60 = vcombine.low %v4235_v50, %v4314_v44 }
 0x36f   :  { %v4322_v12 = vrot.slane %v4315_v60, %v4913_v51 }
 0x371   :  { %v4329_v13 = vrot.slane %v4322_v12, %v4913_v51 }
 0x373   :  { %4335 = vst.msk [vmem:[#allocation3] sm:$0x3] %vm4333_vm0, %v4329_v13 }
 0x374   :  { %4615 = shalt.err (!%p4612_p4)
}
 0x375   :  { %4345 = dma.vmem_to_hbm [thread:$0]  %s4343_s5, 32, %s6083_s7, [#allocation4]  }
 0x376   :  { %4624 = dma.done.wait [#allocation4], 32  }
 0x377   :  { %4625 = vsyncadd [#allocation4], 4294967264 }
 0x378   :  { %4349 = vsyncpa [#allocation4], 1 }

</bundles_post_ra>
